<compile_context>
chip_gen: v6e
topology: v6e:2x2x1
jax: 0.10.0
libtpu: 0.0.40
codegen_flags: <defaults>
</compile_context>

<pallas_src>
import functools

import jax
import jax.numpy as jnp
from jax.experimental import pallas as pl
from jax.experimental.pallas import tpu as pltpu

HID1 = 800
HID2 = 600


def _critic_head_kernel(s_ref, a_ref, w1_ref, w2s_ref, slab_ref, q_ref, *,
                        action_dim):
    """One (head, batch-tile) grid point.

    s_ref   : (BT, state_dim+1)    bf16  [state with trailing ones column]
    a_ref   : (BT, action_dim+1)   f32   [action with trailing ones column]
    w1_ref  : (state_dim+1, 800)   bf16  [layer_1 weight with bias folded in]
    w2s_ref : (800, 600)           bf16
    slab_ref: (action_dim+3, 600)  f32   rows: [W2a ; b2a ; w3_row ; b3]
    q_ref   : (BT, 1)              f32
    """
    # layer 1: relu([s,1] @ [W1; b1])
    h1 = jnp.dot(s_ref[...], w1_ref[...], preferred_element_type=jnp.float32)
    h1 = jnp.maximum(h1, 0.0).astype(jnp.bfloat16)              # (BT, 800)

    slab = slab_ref[...]                                         # (ad+3, 600)

    # layer 2: relu(h1 @ W2s + [a,1] @ [W2a; b2a])   (layer_2_s bias unused)
    z = jnp.dot(h1, w2s_ref[...], preferred_element_type=jnp.float32)
    z = z + jnp.dot(a_ref[...], slab[0:action_dim + 1, :],
                    preferred_element_type=jnp.float32)
    h2 = jnp.maximum(z, 0.0)                                     # (BT, 600) f32

    # layer 3 as a VPU multiply + lane reduction (W3 stored as a row vector)
    w3_row = slab[action_dim + 1:action_dim + 2, :]              # (1, 600)
    b3 = slab[action_dim + 2:action_dim + 3, 0:1]                # (1, 1)
    q_ref[...] = jnp.sum(h2 * w3_row, axis=-1, keepdims=True) + b3


def critic_forward(s, a, params):
    """Dual-Q forward pass; grid = (2 heads, batch tiles)."""
    B = s.shape[0]
    state_dim = s.shape[1]
    action_dim = a.shape[1]

    # Augment with a ones column so the biases ride inside the matmuls.
    s_aug = jnp.concatenate(
        [s.astype(jnp.float32), jnp.ones((B, 1), jnp.float32)], axis=1)
    a_aug = jnp.concatenate(
        [a.astype(jnp.float32), jnp.ones((B, 1), jnp.float32)], axis=1)

    # bf16 packs 16 rows per sublane position -> pad batch to a multiple of 16.
    B_pad = max(16, ((B + 15) // 16) * 16)
    if B_pad != B:
        s_aug = jnp.pad(s_aug, ((0, B_pad - B), (0, 0)))
        a_aug = jnp.pad(a_aug, ((0, B_pad - B), (0, 0)))
    s_aug = s_aug.astype(jnp.bfloat16)

    BT = min(B_pad, 256)          # batch tile; weights stay resident across tiles
    nbt = B_pad // BT
    SD1 = state_dim + 1
    AD1 = action_dim + 1
    SR = action_dim + 3

    kernel = functools.partial(_critic_head_kernel, action_dim=action_dim)

    q = pl.pallas_call(
        kernel,
        out_shape=jax.ShapeDtypeStruct((2, B_pad, 1), jnp.float32),
        grid=(2, nbt),
        in_specs=[
            pl.BlockSpec((BT, SD1), lambda h, bt: (bt, 0)),               # s_aug
            pl.BlockSpec((BT, AD1), lambda h, bt: (bt, 0)),               # a_aug
            pl.BlockSpec((None, SD1, HID1), lambda h, bt: (h, 0, 0)),     # w1 (+b1)
            pl.BlockSpec((None, HID1, HID2), lambda h, bt: (h, 0, 0)),    # w2s
            pl.BlockSpec((None, SR, HID2), lambda h, bt: (h, 0, 0)),      # slab
        ],
        out_specs=pl.BlockSpec((None, BT, 1), lambda h, bt: (h, bt, 0)),
        compiler_params=pltpu.CompilerParams(
            dimension_semantics=("parallel", "parallel"),  # v7x: head per TC
            vmem_limit_bytes=16 * 1024 * 1024,             # footprint ~2.1 MiB
        ),
    )(s_aug, a_aug, params["w1"], params["w2s"], params["slab"])
    # TODO(synk): for repeated inference with fixed params, keep the bf16
    # weights resident in VMEM across calls (P10 cross-call futures) to remove
    # the per-call weight DMA entirely.
    # TODO(synk): on v7x, w1/w2s could additionally be stored in fp8 with a
    # per-tensor scale for another ~2x on the HBM-bound weight fetch.
    return q[0, :B], q[1, :B]


def _linear_params(key, in_dim, out_dim):
    """nn.Linear-style init; W stored as (in, out), b as (1, out)."""
    kw, kb = jax.random.split(key)
    bound = 1.0 / jnp.sqrt(jnp.float32(in_dim))
    w = jax.random.uniform(kw, (in_dim, out_dim), jnp.float32, -bound, bound)
    b = jax.random.uniform(kb, (1, out_dim), jnp.float32, -bound, bound)
    return w, b


def init_critic_params(key, state_dim, action_dim):
    keys = jax.random.split(key, 8)
    w1, b1 = _linear_params(keys[0], state_dim, HID1)
    w2s, _ = _linear_params(keys[1], HID1, HID2)     # layer_2_s bias unused
    w2a, b2a = _linear_params(keys[2], action_dim, HID2)
    w3, b3 = _linear_params(keys[3], HID2, 1)
    w4, b4 = _linear_params(keys[4], state_dim, HID1)
    w5s, _ = _linear_params(keys[5], HID1, HID2)     # layer_5_s bias unused
    w5a, b5a = _linear_params(keys[6], action_dim, HID2)
    w6, b6 = _linear_params(keys[7], HID2, 1)

    def pack_head(wA, bA, wAa, bAa, wB, bB):
        # layer-1 weight with its bias folded as the last row
        w1_aug = jnp.concatenate([wA, bA], axis=0)           # (state_dim+1, 800)
        # small-operand slab (f32, width 600):
        #   rows [0:action_dim]  W2a
        #   row  action_dim      b2a
        #   row  action_dim+1    W3 transposed (row)
        #   row  action_dim+2    b3 broadcast across the row
        slab = jnp.concatenate(
            [wAa, bAa, wB.T, jnp.full((1, HID2), bB[0, 0], jnp.float32)],
            axis=0)                                           # (action_dim+3, 600)
        return w1_aug, slab

    w1h0, slab0 = pack_head(w1, b1, w2a, b2a, w3, b3)
    w1h1, slab1 = pack_head(w4, b4, w5a, b5a, w6, b6)

    params = dict(
        w1=jnp.stack([w1h0, w1h1]).astype(jnp.bfloat16),   # (2, state_dim+1, 800)
        w2s=jnp.stack([w2s, w5s]).astype(jnp.bfloat16),    # (2, 800, 600)
        slab=jnp.stack([slab0, slab1]),                    # (2, action_dim+3, 600) f32
    )
    ref_f32 = dict(
        w1=jnp.stack([w1, w4]), b1=jnp.stack([b1, b4]),
        w2s=jnp.stack([w2s, w5s]),
        w2a=jnp.stack([w2a, w5a]), b2a=jnp.stack([b2a, b5a]),
        w3=jnp.stack([w3, w6]), b3=jnp.stack([b3, b6]),
    )
    return params, ref_f32


def critic_reference_packed(s, a, params, action_dim):
    """Pure-JAX reference mirroring the kernel's packed bf16 math exactly."""
    B = s.shape[0]
    s_aug = jnp.concatenate(
        [s.astype(jnp.float32), jnp.ones((B, 1), jnp.float32)],
        axis=1).astype(jnp.bfloat16)
    a_aug = jnp.concatenate(
        [a.astype(jnp.float32), jnp.ones((B, 1), jnp.float32)], axis=1)

    def head(h):
        h1 = jax.nn.relu(
            jnp.dot(s_aug, params["w1"][h], preferred_element_type=jnp.float32)
        ).astype(jnp.bfloat16)
        z = jnp.dot(h1, params["w2s"][h], preferred_element_type=jnp.float32)
        z = z + jnp.dot(a_aug, params["slab"][h, :action_dim + 1, :],
                        preferred_element_type=jnp.float32)
        h2 = jax.nn.relu(z)
        w3_row = params["slab"][h, action_dim + 1]
        b3 = params["slab"][h, action_dim + 2, 0]
        return jnp.sum(h2 * w3_row[None, :], axis=-1, keepdims=True) + b3

    return head(0), head(1)


def critic_reference_f32(s, a, rp):
    """Full-precision reference matching the PyTorch module's forward."""
    def head(h):
        h1 = jax.nn.relu(s @ rp["w1"][h] + rp["b1"][h])
        z = h1 @ rp["w2s"][h] + a @ rp["w2a"][h] + rp["b2a"][h]
        h2 = jax.nn.relu(z)
        return h2 @ rp["w3"][h] + rp["b3"][h]

    return head(0), head(1)


if __name__ == "__main__":
    key = jax.random.PRNGKey(0)
    k_params, k_s, k_a = jax.random.split(key, 3)

    batch = 2
    state_dim = 24    # laser-scan + goal state typical for this robot-nav repo
    action_dim = 2    # (linear vel, angular vel)

    params, ref_params = init_critic_params(k_params, state_dim, action_dim)
    s = jax.random.normal(k_s, (batch, state_dim), jnp.float32)
    a = jax.random.uniform(k_a, (batch, action_dim), jnp.float32, -1.0, 1.0)

    q1, q2 = critic_forward(s, a, params)
    q1 = jax.block_until_ready(q1)
    q2 = jax.block_until_ready(q2)
    assert q1.shape == (batch, 1) and q2.shape == (batch, 1)

    # Tight check vs. a pure-JAX reference using the same packed bf16 weights.
    r1, r2 = critic_reference_packed(s, a, params, action_dim)
    assert jnp.allclose(q1, r1, atol=1e-2, rtol=1e-2)
    assert jnp.allclose(q2, r2, atol=1e-2, rtol=1e-2)

    # Loose sanity check vs. the full-f32 (PyTorch-equivalent) forward, so the
    # bf16 quantization error is actually measured once.
    f1, f2 = critic_reference_f32(s, a, ref_params)
    assert jnp.allclose(q1, f1, atol=5e-2, rtol=5e-2)
    assert jnp.allclose(q2, f2, atol=5e-2, rtol=5e-2)

    print("KERNEL_OK")
</pallas_src>

<mosaic_0001>
module attributes {stable_mosaic.version = 11 : i64} {
  func.func @_critic_head_kernel(%arg0: i32, %arg1: i32, %arg2: memref<16x25xbf16, #tpu.memory_space<vmem>>, %arg3: memref<16x3xf32, #tpu.memory_space<vmem>>, %arg4: memref<1x25x800xbf16, #tpu.memory_space<vmem>>, %arg5: memref<1x800x600xbf16, #tpu.memory_space<vmem>>, %arg6: memref<1x5x600xf32, #tpu.memory_space<vmem>>, %arg7: memref<1x16x1xf32, #tpu.memory_space<vmem>>) attributes {dimension_semantics = [#tpu.dimension_semantics<parallel>, #tpu.dimension_semantics<parallel>], iteration_bounds = array<i64: 2, 1>, scalar_prefetch = 0 : i64, scratch_operands = 0 : i64, tpu.core_type = #tpu.core_type<tc>, window_params = [{transform_indices = @transform_0, window_bounds = array<i64: 16, 25>}, {transform_indices = @transform_1, window_bounds = array<i64: 16, 3>}, {transform_indices = @transform_2, window_bounds = array<i64: 1, 25, 800>}, {transform_indices = @transform_3, window_bounds = array<i64: 1, 800, 600>}, {transform_indices = @transform_4, window_bounds = array<i64: 1, 5, 600>}, {transform_indices = @transform_5, window_bounds = array<i64: 1, 16, 1>}]} {
    %c0 = arith.constant 0 : index
    %c0_0 = arith.constant 0 : index
    %0 = vector.load %arg2[%c0, %c0_0] : memref<16x25xbf16, #tpu.memory_space<vmem>>, vector<16x25xbf16>
    %c0_1 = arith.constant 0 : index
    %c0_2 = arith.constant 0 : index
    %c0_3 = arith.constant 0 : index
    %1 = vector.load %arg4[%c0_1, %c0_2, %c0_3] : memref<1x25x800xbf16, #tpu.memory_space<vmem>>, vector<1x25x800xbf16>
    %2 = vector.shape_cast %1 : vector<1x25x800xbf16> to vector<25x800xbf16>
    %cst = arith.constant dense<0.000000e+00> : vector<16x800xf32>
    %3 = tpu.matmul %0, %2, %cst {dimension_numbers = #tpu.dot_dimension_numbers<[1], [0], [0], [1], [0, 0, 1, 1], [], []>} : vector<16x25xbf16>, vector<25x800xbf16>, vector<16x800xf32> -> vector<16x800xf32>
    %cst_4 = arith.constant 0.000000e+00 : f32
    %4 = vector.broadcast %cst_4 : f32 to vector<16x800xf32>
    %5 = arith.maximumf %3, %4 : vector<16x800xf32>
    %6 = arith.truncf %5 : vector<16x800xf32> to vector<16x800xbf16>
    %c0_5 = arith.constant 0 : index
    %c0_6 = arith.constant 0 : index
    %c0_7 = arith.constant 0 : index
    %7 = vector.load %arg6[%c0_5, %c0_6, %c0_7] : memref<1x5x600xf32, #tpu.memory_space<vmem>>, vector<1x5x600xf32>
    %8 = vector.shape_cast %7 : vector<1x5x600xf32> to vector<5x600xf32>
    %c0_8 = arith.constant 0 : index
    %c0_9 = arith.constant 0 : index
    %c0_10 = arith.constant 0 : index
    %9 = vector.load %arg5[%c0_8, %c0_9, %c0_10] : memref<1x800x600xbf16, #tpu.memory_space<vmem>>, vector<1x800x600xbf16>
    %10 = vector.shape_cast %9 : vector<1x800x600xbf16> to vector<800x600xbf16>
    %cst_11 = arith.constant dense<0.000000e+00> : vector<16x600xf32>
    %11 = tpu.matmul %6, %10, %cst_11 {dimension_numbers = #tpu.dot_dimension_numbers<[1], [0], [0], [1], [0, 0, 1, 1], [], []>} : vector<16x800xbf16>, vector<800x600xbf16>, vector<16x600xf32> -> vector<16x600xf32>
    %c0_12 = arith.constant 0 : index
    %c0_13 = arith.constant 0 : index
    %12 = vector.load %arg3[%c0_12, %c0_13] : memref<16x3xf32, #tpu.memory_space<vmem>>, vector<16x3xf32>
    %13 = vector.extract_strided_slice %8 {offsets = [0, 0], sizes = [3, 600], strides = [1, 1]} : vector<5x600xf32> to vector<3x600xf32>
    %cst_14 = arith.constant dense<0.000000e+00> : vector<16x600xf32>
    %14 = tpu.matmul %12, %13, %cst_14 {dimension_numbers = #tpu.dot_dimension_numbers<[1], [0], [0], [1], [0, 0, 1, 1], [], []>} : vector<16x3xf32>, vector<3x600xf32>, vector<16x600xf32> -> vector<16x600xf32>
    %15 = arith.addf %11, %14 : vector<16x600xf32>
    %cst_15 = arith.constant 0.000000e+00 : f32
    %16 = vector.broadcast %cst_15 : f32 to vector<16x600xf32>
    %17 = arith.maximumf %15, %16 : vector<16x600xf32>
    %18 = vector.extract_strided_slice %8 {offsets = [3, 0], sizes = [1, 600], strides = [1, 1]} : vector<5x600xf32> to vector<1x600xf32>
    %19 = vector.extract_strided_slice %8 {offsets = [4, 0], sizes = [1, 1], strides = [1, 1]} : vector<5x600xf32> to vector<1x1xf32>
    %20 = vector.broadcast %18 : vector<1x600xf32> to vector<16x600xf32>
    %21 = arith.mulf %17, %20 : vector<16x600xf32>
    %cst_16 = arith.constant dense<0.000000e+00> : vector<16xf32>
    %22 = vector.multi_reduction <add>, %21, %cst_16 [1] : vector<16x600xf32> to vector<16xf32>
    %23 = vector.shape_cast %22 : vector<16xf32> to vector<16x1xf32>
    %24 = vector.broadcast %19 : vector<1x1xf32> to vector<16x1xf32>
    %25 = arith.addf %23, %24 : vector<16x1xf32>
    %c0_17 = arith.constant 0 : index
    %c0_18 = arith.constant 0 : index
    %c0_19 = arith.constant 0 : index
    %26 = vector.load %arg7[%c0_17, %c0_18, %c0_19] : memref<1x16x1xf32, #tpu.memory_space<vmem>>, vector<1x16x1xf32>
    %27 = vector.shape_cast %26 : vector<1x16x1xf32> to vector<16x1xf32>
    %28 = vector.shape_cast %25 : vector<16x1xf32> to vector<1x16x1xf32>
    tpu.vector_store %arg7[%c0_17, %c0_18, %c0_19], %28 {strides = array<i32>} : memref<1x16x1xf32, #tpu.memory_space<vmem>>, vector<1x16x1xf32>,
    return
  }
  func.func @transform_0(%arg0: i32, %arg1: i32) -> (i32, i32) {
    %c0_i32 = arith.constant 0 : i32
    %c0_i32_0 = arith.constant 0 : i32
    return %arg1, %c0_i32 : i32, i32
  }
  func.func @transform_1(%arg0: i32, %arg1: i32) -> (i32, i32) {
    %c0_i32 = arith.constant 0 : i32
    %c0_i32_0 = arith.constant 0 : i32
    return %arg1, %c0_i32 : i32, i32
  }
  func.func @transform_2(%arg0: i32, %arg1: i32) -> (i32, i32, i32) {
    %c0_i32 = arith.constant 0 : i32
    %c0_i32_0 = arith.constant 0 : i32
    %c0_i32_1 = arith.constant 0 : i32
    return %arg0, %c0_i32, %c0_i32_0 : i32, i32, i32
  }
  func.func @transform_3(%arg0: i32, %arg1: i32) -> (i32, i32, i32) {
    %c0_i32 = arith.constant 0 : i32
    %c0_i32_0 = arith.constant 0 : i32
    %c0_i32_1 = arith.constant 0 : i32
    return %arg0, %c0_i32, %c0_i32_0 : i32, i32, i32
  }
  func.func @transform_4(%arg0: i32, %arg1: i32) -> (i32, i32, i32) {
    %c0_i32 = arith.constant 0 : i32
    %c0_i32_0 = arith.constant 0 : i32
    %c0_i32_1 = arith.constant 0 : i32
    return %arg0, %c0_i32, %c0_i32_0 : i32, i32, i32
  }
  func.func @transform_5(%arg0: i32, %arg1: i32) -> (i32, i32, i32) {
    %c0_i32 = arith.constant 0 : i32
    %c0_i32_0 = arith.constant 0 : i32
    return %arg0, %arg1, %c0_i32 : i32, i32, i32
  }
}

</mosaic_0001>

<bundles_post_ra>
// kernel: tpu_custom_call.1
= control target key start
LH: loop header
LB: loop body
LE: loop exit
PB: predicated region body
PF: predicated region fallthrough
CT: control target
= control target key end

     0   :  { %10 = vsyncpa [#allocation3], 0  ;;  %s4762_s0 = inlined_call_operand.hbm [shape: bf16[16,25], index: 0, kind: input, shape index: {}]   ;;  %s4763_s1 = inlined_call_operand.vmem [shape: f32[16,3], index: 1, kind: input, shape index: {}]   ;;  %s4764_s2 = inlined_call_operand.vmem [shape: bf16[2,25,800], index: 2, kind: input, shape index: {}]   ;;  %s4765_s3 = inlined_call_operand.hbm [shape: bf16[2,800,600], index: 3, kind: input, shape index: {}]   ;;  %s4766_s4 = inlined_call_operand.vmem [shape: f32[2,5,600], index: 4, kind: input, shape index: {}]   ;;  %s4767_s5 = inlined_call_operand.vmem [shape: f32[2,16,1], index: 5, kind: output, shape index: {}]  }
   0x1   :  { %11 = vsyncpa [#allocation5], 0 }
   0x2   :  { %13 = vsyncpa [#allocation5 + $0x1], 0  ;;  %s4243_s18 = smov 0   ;;  %s4245_s19 = smov 0  }
   0x3   :  { %s4247_s20 = smov 0   ;;  %s4249_s21 = smov 0  }
   0x4   :  { %s4251_s22 = smov 0   ;;  %s4253_s23 = smov 0  }
   0x5 LB: > { %s3243_s24 = sadd.s32 4294967295, %s4201_s23   ;;  %p129_p0 = scmp.ne.s32.totalorder %s4185_s19, %s4181_s18  ;;  %s4201_s23 = sphi %s4253_s23, %s19_s23   ;;  %s4197_s22 = sphi %s4251_s22, %s4777_s22   ;;  %s4193_s21 = sphi %s4249_s21, %s4776_s21   ;;  %s4189_s20 = sphi %s4247_s20, %s4775_s20   ;;  %s4185_s19 = sphi %s4245_s19, %s4774_s19   ;;  %s4181_s18 = sphi %s4243_s18, %s4773_s18  }
   0x6   : > { %p4273_p1 = scmp.eq.s32.totalorder %s3243_s24, 0  ;;  %p3245_p2 = scmp.ge.s32.totalorder %s4201_s23, 1 }
   0x7   : > { %p194_p3 = scmp.lt.s32.totalorder %s4201_s23, 3  ;;  %s4203_s28 = smov [#allocation2]  }
   0x8   : > { %p4281_p4 = por %p4273_p1, %p129_p0  ;;  %s209_s29 = sshll.u32 %s4203_s28, 4  ;;  %s210_s29 = int_to_ptr.vmem [resolvable:$true] %s209_s29 }
   0x9   : > { %p4285_p5 = pnand %p3245_p2, %p194_p3  ;;  %s31_s6 = sadd.s32 1, %s4197_s22 }
   0xa   : > { %s4104_s7 = scalar_lea.vmem %s210_s29, 128  ;;  %p4112_p12 = scmp.lt.s32.totalorder %s210_s29, %s210_s29 }
   0xb   : > { %p3649_p6 = pneg %p4285_p5  ;;  %p4105_p9 = scmp.ne.s32.totalorder %s210_s29, %s4104_s7 }
   0xc   : > { %p4113_p13 = scmp.lt.s32.totalorder %s4104_s7, %s4104_s7 }
   0xd   : > { %p4293_p7 = pnand %p3649_p6, %p4273_p1 }
   0xe   : > { %p4114_p0 = por %p4113_p13, %p4112_p12 }
   0xf   : > { %p4095_p8 = pneg %p4293_p7 }
  0x11   : > { %p4107_p10 = pnand %p4105_p9, %p4095_p8 }
  0x13   : > { %p4108_p11 = pneg %p4107_p10 }
  0x15   : > { %p4115_p2 = pnand %p4114_p0, %p4108_p11 }
  0x17   : > { %4118 = shalt.err (!%p4115_p2)
}
  0x18   : > { %s4204_s8 = smov 64   ;;  %s4205_s9 = smov 4  }
  0x19   : > { %3652 = dma.hbm_to_vmem [thread:$0]  (!%p4293_p7), %s4762_s0, 128, %s210_s29, [#allocation3], %s4204_s8, %s4204_s8, %s4205_s9  }
  0x1a   : > { %p33_p3 = scmp.ge.s32.totalorder %s31_s6, 2  ;;  %s116_s12 = sadd.s32 1, %s4189_s20 }
  0x1b   : > { %p123_p6 = scmp.ne.s32.totalorder %s4189_s20, %s4185_s19  ;;  %p124_p8 = scmp.eq.s32.totalorder %s4201_s23, 0 }
  0x1c   : > { %s4779_s6 = smov (%p33_p3, %s31_s6), 0  ;;  %p3658_p10 = scmp.lt.s32.totalorder %s4201_s23, 2 }
  0x1d   : > { %p125_p9 = por %p124_p8, %p123_p6  ;;  %s113_s13 = ssub.s32 %s4197_s22, %s4779_s6 }
  0x1e   : > { %s240_s14 = sand.u32 1, %s4189_s20   ;;  %p114_p11 = scmp.eq.s32.totalorder %s113_s13, 0 }
  0x1f   : > { %s3638_s15 = smul.u32 2000, %s240_s14  ;;  %p4315_p12 = pnand %p3658_p10, %p125_p9 }
  0x20   : > { %s4320_s17 = scalar_select %p114_p11, %s4189_s20, %s116_s12  }
  0x21   : > { %s3639_s18 = smul.u32 32000, %s4197_s22  ;;  %s244_s24 = scalar_lea.vmem [#allocation4], %s3638_s15 }
  0x22   : > { %s251_s28 = sshll.u32 %s244_s24, 4  ;;  %s241_s8 = scalar_lea.sflag [#allocation5], %s240_s14  ;;  %s252_s28 = int_to_ptr.vmem [resolvable:$true] %s251_s28 }
  0x23   : > { %s250_s7 = scalar_lea.hbm %s4765_s3, %s3639_s18  ;;  %p4121_p7 = pneg %p4315_p12 }
  0x24   : > { %s4132_s9 = scalar_lea.vmem %s252_s28, 32000  ;;  %s4206_s10 = smov [#allocation4]  }
  0x25   : > { %p4133_p13 = scmp.ne.s32.totalorder %s252_s28, %s4132_s9  ;;  %s4137_s11 = sshll.u32 %s4206_s10, 4  ;;  %s4138_s11 = int_to_ptr.vmem [resolvable:$false] %s4137_s11 }
  0x26   : > { %s4139_s12 = scalar_lea.vmem %s4138_s11, 64000  ;;  %p4140_p3 = scmp.lt.s32.totalorder %s252_s28, %s4138_s11 }
  0x27   : > { %p4135_p0 = pnand %p4133_p13, %p4121_p7  ;;  %p4141_p6 = scmp.lt.s32.totalorder %s4139_s12, %s4132_s9 }
  0x29   : > { %p4136_p2 = pneg %p4135_p0  ;;  %p4142_p8 = por %p4141_p6, %p4140_p3 }
  0x2b   : > { %p4143_p9 = pnand %p4142_p8, %p4136_p2 }
  0x2d   : > { %4146 = shalt.err (!%p4143_p9)
}
  0x2e   : > { %s4207_s13 = smov 320   ;;  %s4208_s15 = smov 20  }
  0x2f   : > { %3656 = dma.hbm_to_vmem [thread:$0]  (!%p4315_p12), %s250_s7, 32000, %s252_s28, %s241_s8, %s4207_s13, %s4207_s13, %s4208_s15  }
  0x30   : > { %271 = sbr.rel (%p4285_p5) target bundleno = 833 (0x341), region = 40 }
  0x35   : > { %4172 = dma.done.wait (%p4273_p1), [#allocation3], 128  }
  0x36   : > { %4174 = vsyncadd (%p4273_p1), [#allocation3], 4294967168  ;;  %s277_s14 = sand.u32 1, %s4185_s19  }
  0x37   : > { %s3640_s18 = smul.u32 2000, %s277_s14  ;;  %s278_s24 = scalar_lea.sflag [#allocation5], %s277_s14 }
  0x39   : > { %s4337_s29 = scalar_lea.vmem [#allocation4], %s3640_s18 }
  0x3a   : > { %4176 = dma.done.wait (%p4281_p4), %s278_s24, 32000  }
  0x3b   : > { %4178 = vsyncadd (%p4281_p4), %s278_s24, 4294935296  ;;  %p334_p5 = scmp.lt.s32.totalorder %s4193_s21, 1  ;;  %vm447_vm0 = vcmask 1043456   ;;  %v4209_v0 = vmov 0   ;;  %v4210_v1 = vmov 0.0   ;;  %vm4211_vm1 = vmmov 0  }
  0x3c   : > { %504 = vmatprep.mubr.bf16.mxu0 %v4209_v0  ;;  %3617 = vmatprep.subr.bf16.mxu1 %v4210_v1  ;;  %vm448_vm2 = vcmask 1044480   ;;  %v4212_v2 = vmov 65535   ;;  %v3723_v15 = vld [vmem:[#allocation2] sm:$0xff]   ;;  %vm443_vm3 = vcmask 203776   ;;  %vm977_vm4 = vcmask 1042432   ;;  %v969_v38 = vld [vmem:[%s4763_s1 + $0x8] sm:$0xff] }
  0x3d   : > { %s4781_s21 = smov (!%p334_p5, %s4193_s21), 1  ;;  %3621 = vmatprep.mubr.msk.bf16.mxu1 %vm4211_vm1, %v4210_v1  ;;  %v449_v3 = vsel %vm447_vm0, 4294967295, %v4212_v2  ;;  %v3740_v26 = vld [vmem:[%s4337_s29 + $0x11c] ss:$20 sps:$4 sm:$0xff]   ;;  %vm970_vm5 = vcmask 23552   ;;  %vm2522_vm6 = vcmask 261120  }
  0x3e   : > { %s3641_s25 = smul.u32 112, %s4781_s21  ;;  %v450_v4 = vsel %vm448_vm2, %v449_v3, 0  ;;  %v968_v31 = vld [vmem:[%s4763_s1] sm:$0xff]  ;;  %v3741_v35 = vld [vmem:[%s4337_s29 + $0xf0] ss:$20 sps:$4 sm:$0xff]   ;;  %vm3077_vm7 = vcmask 719872  }
  0x3f   : > { %s3642_s28 = smul.u32 40, %s4781_s21  ;;  %v3738_v32 = vld [vmem:[%s4337_s29 + $0x118] ss:$20 sps:$4 sm:$0xff]   ;;  %v3743_v33 = vld [vmem:[%s4337_s29 + $0xf4] ss:$20 sps:$4 sm:$0xff]   ;;  %s3541_s13 = sshll.u32 %s4781_s21, 4 }
  0x40   : > { %s4355_s16 = scalar_lea.vmem %s4764_s2, %s3641_s25  ;;  %v3746_v37 = vld [vmem:[%s4337_s29 + $0xcc] ss:$20 sps:$4 sm:$0xff]   ;;  %v3744_v39 = vld [vmem:[%s4337_s29 + $0xc8] ss:$20 sps:$4 sm:$0xff]   ;;  %v3752_v40 = vld [vmem:[%s4337_s29 + $0xa4] ss:$20 sps:$4 sm:$0xff]   ;;  %s352_s18 = scalar_lea.vmem %s4767_s5, %s3541_s13 }
  0x41   : > { %v3717_v5 = vld [vmem:[%s4355_s16 + $0x3c] ss:$28 sps:$4 sm:$0x1f]   ;;  %v3720_v8 = vld [vmem:[%s4355_s16 + $0x4] ss:$28 sps:$4 sm:$0xff]   ;;  %s4370_s8 = scalar_lea.vmem %s4766_s4, %s3642_s28  ;;  %vm3095_vm8 = vcmask 7168  }
  0x42   : > { %v3719_v6 = vld [vmem:[%s4355_s16 + $0x38] ss:$28 sps:$4 sm:$0x1f]   ;;  %v455_v7 = vand.u32 %v3717_v5, %v450_v4  ;;  %v3724_v10 = vld [vmem:[%s4355_s16 + $0x40] ss:$28 sps:$4 sm:$0x1f]  }
  0x43   : > { %v452_v9 = vand.u32 %v3719_v6, %v450_v4  ;;  %v3722_v11 = vld [vmem:[%s4355_s16] ss:$28 sps:$4 sm:$0xff]   ;;  %v3730_v14 = vld [vmem:[%s4355_s16 + $0x50] ss:$28 sps:$4 sm:$0x1f]   ;;  %v458_v16 = vand.u32 %v3724_v10, %v450_v4 }
  0x44   : > { %484 = vmatprep.subr.bf16.mxu0 %v455_v7  ;;  %v3726_v12 = vld [vmem:[%s4355_s16 + $0x44] ss:$28 sps:$4 sm:$0x1f]   ;;  %v3729_v17 = vld [vmem:[%s4355_s16 + $0xc] ss:$28 sps:$4 sm:$0xff]   ;;  %v470_v18 = vand.u32 %v3730_v14, %v450_v4 }
  0x45   : > { %485 = vmatpush1.bf16.msra.mxu0 %v452_v9  ;;  %v461_v13 = vand.u32 %v3726_v12, %v450_v4  ;;  %v3734_v19 = vld [vmem:[%s4355_s16 + $0x4c] ss:$28 sps:$4 sm:$0x1f]   ;;  %v3731_v20 = vld [vmem:[%s4355_s16 + $0x18] ss:$28 sps:$4 sm:$0xff]  }
  0x46   : > { %486 = vmatprep.subr.bf16.mxu0 %v3720_v8  ;;  %3618 = vmatpush3.bf16.msra.mxu1 %v470_v18  ;;  %v3727_v21 = vld [vmem:[%s4355_s16 + $0x8] ss:$28 sps:$4 sm:$0xff]   ;;  %v666_v23 = vld [vmem:[%s4370_s8 + $0x18] sm:$0x1f]  ;;  %v467_v24 = vand.u32 %v3734_v19, %v450_v4  ;;  %v665_v25 = vld [vmem:[%s4370_s8 + $0x10] sm:$0x1f] }
  0x47   : > { %3619 = vmatprep.subr.bf16.mxu1 %v4210_v1  ;;  %v3732_v22 = vld [vmem:[%s4355_s16 + $0x48] ss:$28 sps:$4 sm:$0x1f]   ;;  %v3737_v28 = vld [vmem:[%s4355_s16 + $0x14] ss:$28 sps:$4 sm:$0xff]  }
  0x48   : > { %v464_v27 = vand.u32 %v3732_v22, %v450_v4  ;;  %v3735_v29 = vld [vmem:[%s4355_s16 + $0x10] ss:$28 sps:$4 sm:$0xff]   ;;  %v663_v34 = vld [vmem:[%s4370_s8] sm:$0x1f] }
  0x49   : > { %487 = vmatpush1.bf16.msra.mxu0 %v3722_v11  ;;  %v664_v30 = vld [vmem:[%s4370_s8 + $0x8] sm:$0x1f]  ;;  %v667_v36 = vld [vmem:[%s4370_s8 + $0x20] sm:$0x1f] }
  0x4a   : > { %527 = vmatprep.subr.bf16.mxu0 %v461_v13  ;;  %3620 = vmatpush3.bf16.msra.mxu1 %v3731_v20  ;;  %v3749_v41 = vld [vmem:[%s4337_s29 + $0x39c] ss:$20 sps:$4 sm:$0xff]   ;;  %v3750_v42 = vld [vmem:[%s4337_s29 + $0xa0] ss:$20 sps:$4 sm:$0xff]   ;;  %v3756_v44 = vld [vmem:[%s4337_s29 + $0x78] ss:$20 sps:$4 sm:$0xff]  }
  0x4b   : > { %3279 = vmatprep.subr.msk.mxu1 %vm977_vm4, %v666_v23  ;;  %v3758_v43 = vld [vmem:[%s4337_s29 + $0x7c] ss:$20 sps:$4 sm:$0xff]   ;;  %v3764_v45 = vld [vmem:[%s4337_s29 + $0x54] ss:$20 sps:$4 sm:$0xff]   ;;  %v3747_v46 = vld [vmem:[%s4337_s29 + $0x398] ss:$20 sps:$4 sm:$0xff]  }
  0x4c   : > { %3271 = vmatmul.mubr.msk.bf16.vlgmr.msra.gmra.mxu0 %vm443_vm3, %v3723_v15  ;;  %v3755_v47 = vld [vmem:[%s4337_s29 + $0x374] ss:$20 sps:$4 sm:$0xff]   ;;  %v3762_v48 = vld [vmem:[%s4337_s29 + $0x50] ss:$20 sps:$4 sm:$0xff]   ;;  %v3770_v49 = vld [vmem:[%s4337_s29 + $0x2c] ss:$20 sps:$4 sm:$0xff]  }
  0x4d   : > { %528 = vmatpush1.bf16.msra.mxu0 %v458_v16  ;;  %547 = vmatprep.mubr.bf16.mxu0 %v4209_v0  ;;  %v3753_v50 = vld [vmem:[%s4337_s29 + $0x370] ss:$20 sps:$4 sm:$0xff]   ;;  %v3761_v51 = vld [vmem:[%s4337_s29 + $0x34c] ss:$20 sps:$4 sm:$0xff]   ;;  %v3759_v52 = vld [vmem:[%s4337_s29 + $0x348] ss:$20 sps:$4 sm:$0xff]  }
  0x4e   : > { %529 = vmatprep.subr.bf16.mxu0 %v3729_v17  ;;  %3622 = vmatmul.mubr.msk.bf16.vlgmr.msra.gmra.mxu1 %vm443_vm3, %v3723_v15  ;;  %v3768_v53 = vld [vmem:[%s4337_s29 + $0x28] ss:$20 sps:$4 sm:$0xff]   ;;  %v3767_v54 = vld [vmem:[%s4337_s29 + $0x324] ss:$20 sps:$4 sm:$0xff]   ;;  %v3774_v56 = vld [vmem:[%s4337_s29] ss:$20 sps:$4 sm:$0xff]  }
  0x4f   : > { %3280 = vmatpush1.msk.msra.mxu1 %vm977_vm4, %v665_v25  ;;  %1134 = vmatprep.mubr.f32.mxu1 %v4210_v1  ;;  %v3776_v55 = vld [vmem:[%s4337_s29 + $0x4] ss:$20 sps:$4 sm:$0xff]   ;;  %v3782_v57 = vld [vmem:[%s4337_s29 + $0x25c] ss:$20 sps:$4 sm:$0xff]   ;;  %v3765_v58 = vld [vmem:[%s4337_s29 + $0x320] ss:$20 sps:$4 sm:$0xff]  }
  0x50   : > { %2526 = vmatprep.subr.bf16.mxu1 %v3740_v26  ;;  %v3773_v59 = vld [vmem:[%s4337_s29 + $0x2fc] ss:$20 sps:$4 sm:$0xff]   ;;  %v3780_v60 = vld [vmem:[%s4337_s29 + $0x258] ss:$20 sps:$4 sm:$0xff]   ;;  %v3788_v61 = vld [vmem:[%s4337_s29 + $0x234] ss:$20 sps:$4 sm:$0xff]  }
  0x51   : > { %530 = vmatpush1.bf16.msra.mxu0 %v3727_v21  ;;  %v3771_v62 = vld [vmem:[%s4337_s29 + $0x2f8] ss:$20 sps:$4 sm:$0xff]   ;;  %v3779_v63 = vld [vmem:[%s4337_s29 + $0x2d4] ss:$20 sps:$4 sm:$0xff]   ;;  %v3786_v2 = vld [vmem:[%s4337_s29 + $0x230] ss:$20 sps:$4 sm:$0xff]  }
  0x52   : > { %570 = vmatprep.subr.bf16.mxu0 %v467_v24  ;;  %v3794_v3 = vld [vmem:[%s4337_s29 + $0x20c] ss:$20 sps:$4 sm:$0xff]   ;;  %v3777_v4 = vld [vmem:[%s4337_s29 + $0x2d0] ss:$20 sps:$4 sm:$0xff]   ;;  %v3792_v6 = vld [vmem:[%s4337_s29 + $0x208] ss:$20 sps:$4 sm:$0xff]  }
  0x53   : > { %v3785_v5 = vld [vmem:[%s4337_s29 + $0x2ac] ss:$20 sps:$4 sm:$0xff]   ;;  %v3800_v7 = vld [vmem:[%s4337_s29 + $0x1e4] ss:$20 sps:$4 sm:$0xff]   ;;  %v3783_v8 = vld [vmem:[%s4337_s29 + $0x2a8] ss:$20 sps:$4 sm:$0xff]  }
  0x54   : > { %3272 = vmatmul.mubr.msk.bf16.vlgmr.msra.gmra.mxu0 %vm443_vm3, %v3723_v15  ;;  %v3791_v9 = vld [vmem:[%s4337_s29 + $0x284] ss:$20 sps:$4 sm:$0xff]   ;;  %v3798_v10 = vld [vmem:[%s4337_s29 + $0x1e0] ss:$20 sps:$4 sm:$0xff]   ;;  %v3806_v11 = vld [vmem:[%s4337_s29 + $0x1bc] ss:$20 sps:$4 sm:$0xff]  }
  0x55   : > { %571 = vmatpush1.bf16.msra.mxu0 %v464_v27  ;;  %590 = vmatprep.mubr.bf16.mxu0 %v4209_v0  ;;  %v3789_v12 = vld [vmem:[%s4337_s29 + $0x280] ss:$20 sps:$4 sm:$0xff]   ;;  %v3797_v13 = vld [vmem:[%s4337_s29 + $0x4dc] ss:$20 sps:$4 sm:$0xff]   ;;  %v3804_v14 = vld [vmem:[%s4337_s29 + $0x1b8] ss:$20 sps:$4 sm:$0xff]  }
  0x56   : > { %572 = vmatprep.subr.bf16.mxu0 %v3737_v28  ;;  %3281 = vmatmul.mubr.msk.f32.vlgmr.msra.gmra.mxu1 %vm970_vm5, %v968_v31  ;;  %v3795_v16 = vld [vmem:[%s4337_s29 + $0x4d8] ss:$20 sps:$4 sm:$0xff]   ;;  %v3803_v17 = vld [vmem:[%s4337_s29 + $0x4b4] ss:$20 sps:$4 sm:$0xff]   ;;  %v3810_v18 = vld [vmem:[%s4337_s29 + $0x190] ss:$20 sps:$4 sm:$0xff]  }
  0x57   : > { %2527 = vmatpush1.bf16.msra.mxu1 %v3738_v32  ;;  %1140 = vmatprep.mubr.f32.mxu1 %v4210_v1  ;;  %v3801_v19 = vld [vmem:[%s4337_s29 + $0x4b0] ss:$20 sps:$4 sm:$0xff]   ;;  %v3818_v20 = vld [vmem:[%s4337_s29 + $0x16c] ss:$20 sps:$4 sm:$0xff]   ;;  %v3816_v22 = vld [vmem:[%s4337_s29 + $0x168] ss:$20 sps:$4 sm:$0xff]  }
  0x58   : > { %2528 = vmatprep.subr.bf16.mxu1 %v3743_v33  ;;  %v3809_v21 = vld [vmem:[%s4337_s29 + $0x48c] ss:$20 sps:$4 sm:$0xff]   ;;  %v3807_v23 = vld [vmem:[%s4337_s29 + $0x488] ss:$20 sps:$4 sm:$0xff]   ;;  %v3824_v24 = vld [vmem:[%s4337_s29 + $0x144] ss:$20 sps:$4 sm:$0xff]  }
  0x59   : > { %573 = vmatpush1.bf16.msra.mxu0 %v3735_v29  ;;  %v3815_v25 = vld [vmem:[%s4337_s29 + $0x464] ss:$20 sps:$4 sm:$0xff]   ;;  %v3822_v26 = vld [vmem:[%s4337_s29 + $0x140] ss:$20 sps:$4 sm:$0xff]   ;;  %v3833_v28 = vld [vmem:[%s4337_s29 + $0x61c] ss:$20 sps:$4 sm:$0xff]  }
  0x5a   : > { %3275 = vmatprep.subr.msk.mxu0 %vm977_vm4, %v664_v30  ;;  %3282 = vmatmul.mubr.msk.f32.gmra.mxu1 %vm970_vm5, %v969_v38  ;;  %v3813_v27 = vld [vmem:[%s4337_s29 + $0x460] ss:$20 sps:$4 sm:$0xff]   ;;  %v3821_v29 = vld [vmem:[%s4337_s29 + $0x43c] ss:$20 sps:$4 sm:$0xff]   ;;  %v3819_v30 = vld [vmem:[%s4337_s29 + $0x438] ss:$20 sps:$4 sm:$0xff]  }
  0x5b   : > { %2529 = vmatpush1.bf16.msra.mxu1 %v3741_v35  ;;  %v3825_v32 = vld [vmem:[%s4337_s29 + $0x410] ss:$20 sps:$4 sm:$0xff]   ;;  %v3830_v33 = vld [vmem:[%s4337_s29 + $0x3ec] ss:$20 sps:$4 sm:$0xff]  }
  0x5c   : > { %3273 = vmatmul.mubr.msk.bf16.vlgmr.msra.gmra.mxu0 %vm443_vm3, %v3723_v15  ;;  %2530 = vmatprep.subr.bf16.mxu1 %v3746_v37  ;;  %v3812_v15 = vld [vmem:[%s4337_s29 + $0x194] ss:$20 sps:$4 sm:$0xff]   ;;  %v3836_v35 = vld [vmem:[%s4337_s29 + $0x3c4] ss:$20 sps:$4 sm:$0xff]   ;;  %v3845_v37 = vld [vmem:[%s4337_s29 + $0x7ac] ss:$20 sps:$4 sm:$0xff]  }
  0x5d   : > { %3276 = vmatpush1.msk.msra.mxu0 %vm977_vm4, %v663_v34  ;;  %1057 = vmatprep.mubr.f32.mxu0 %v4210_v1  ;;  %v3828_v34 = vld [vmem:[%s4337_s29 + $0x3e8] ss:$20 sps:$4 sm:$0xff]  }
  0x5e   : > { %3625 = vmatprep.subr.msk.mxu0 %vm977_vm4, %v667_v36 }
  0x5f   : > { %2531 = vmatpush1.bf16.msra.mxu1 %v3744_v39 }
  0x60   : > { %2532 = vmatprep.subr.bf16.mxu1 %v3752_v40 }
  0x63   : > { %2533 = vmatpush1.bf16.msra.mxu1 %v3750_v42 }
  0x64   : > { %3277 = vmatmul.mubr.msk.f32.vlgmr.msra.gmra.mxu0 %vm970_vm5, %v968_v31  ;;  %2534 = vmatprep.subr.bf16.mxu1 %v3758_v43 }
  0x65   : > { %1063 = vmatprep.mubr.f32.mxu0 %v4210_v1  ;;  %3626 = vmatpush3.msk.msra.mxu0 %vm977_vm4, %v667_v36  ;;  %v3834_v36 = vld [vmem:[%s4337_s29 + $0x3c0] ss:$20 sps:$4 sm:$0xff]  }
  0x66   : > { %2569 = vmatprep.subr.bf16.mxu0 %v3749_v41 }
  0x67   : > { %2535 = vmatpush1.bf16.msra.mxu1 %v3756_v44 }
  0x68   : > { %3278 = vmatmul.mubr.msk.f32.gmra.mxu0 %vm970_vm5, %v969_v38  ;;  %2536 = vmatprep.subr.bf16.mxu1 %v3764_v45 }
  0x69   : > { %3627 = vmatprep.mubr.msk.f32.mxu0 %vm970_vm5, %v968_v31  ;;  %v3827_v31 = vld [vmem:[%s4337_s29 + $0x414] ss:$20 sps:$4 sm:$0xff]  }
  0x6b   : > { %2537 = vmatpush1.bf16.msra.mxu1 %v3762_v48 }
  0x6c   : > { %3628 = vmatmul.mubr.msk.f32.vlgmr.msra.gmra.mxu0 %vm970_vm5, %v969_v38  ;;  %2538 = vmatprep.subr.bf16.mxu1 %v3770_v49 }
  0x6d   : > { %2570 = vmatpush1.bf16.msra.mxu0 %v3747_v46 }
  0x6e   : > { %2571 = vmatprep.subr.bf16.mxu0 %v3755_v47 }
  0x6f   : > { %2539 = vmatpush1.bf16.msra.mxu1 %v3768_v53  ;;  %v3839_v53 = vld [vmem:[%s4337_s29 + $0x5f4] ss:$20 sps:$4 sm:$0xff]  }
  0x70   : > { %2540 = vmatprep.subr.bf16.mxu1 %v3776_v55 }
  0x71   : > { %2572 = vmatpush1.bf16.msra.mxu0 %v3753_v50  ;;  %v3831_v50 = vld [vmem:[%s4337_s29 + $0x618] ss:$20 sps:$4 sm:$0xff]  }
  0x72   : > { %2573 = vmatprep.subr.bf16.mxu0 %v3761_v51 }
  0x73   : > { %2541 = vmatpush1.bf16.msra.mxu1 %v3774_v56 }
  0x74   : > { %2542 = vmatprep.subr.bf16.mxu1 %v3782_v57 }
  0x75   : > { %2574 = vmatpush1.bf16.msra.mxu0 %v3759_v52 }
  0x76   : > { %2575 = vmatprep.subr.bf16.mxu0 %v3767_v54 }
  0x77   : > { %2543 = vmatpush2.bf16.msra.mxu1 %v3780_v60  ;;  %v3837_v60 = vld [vmem:[%s4337_s29 + $0x5f0] ss:$20 sps:$4 sm:$0xff]  }
  0x78   : > { %2544 = vmatprep.subr.bf16.mxu1 %v3788_v61 }
  0x79   : > { %2576 = vmatpush1.bf16.msra.mxu0 %v3765_v58 }
  0x7a   : > { %2577 = vmatprep.subr.bf16.mxu0 %v3773_v59 }
  0x7b   : > { %2545 = vmatpush2.bf16.msra.mxu1 %v3786_v2 }
  0x7c   : > { %2546 = vmatprep.subr.bf16.mxu1 %v3794_v3 }
  0x7d   : > { %2578 = vmatpush1.bf16.msra.mxu0 %v3771_v62  ;;  %v3842_v62 = vld [vmem:[%s4337_s29 + $0x5cc] ss:$20 sps:$4 sm:$0xff]  }
  0x7e   : > { %2579 = vmatprep.subr.bf16.mxu0 %v3779_v63 }
  0x7f   : > { %2547 = vmatpush2.bf16.msra.mxu1 %v3792_v6  ;;  %v3843_v6 = vld [vmem:[%s4337_s29 + $0x7a8] ss:$20 sps:$4 sm:$0xff]  }
  0x80   : > { %2548 = vmatprep.subr.bf16.mxu1 %v3800_v7  ;;  %v3848_v7 = vld [vmem:[%s4337_s29 + $0x5a4] ss:$20 sps:$4 sm:$0xff]  }
  0x81   : > { %2580 = vmatpush1.bf16.msra.mxu0 %v3777_v4 }
  0x82   : > { %2581 = vmatprep.subr.bf16.mxu0 %v3785_v5  ;;  %v3840_v5 = vld [vmem:[%s4337_s29 + $0x5c8] ss:$20 sps:$4 sm:$0xff]  }
  0x83   : > { %2549 = vmatpush2.bf16.msra.mxu1 %v3798_v10 }
  0x84   : > { %2550 = vmatprep.subr.bf16.mxu1 %v3806_v11 }
  0x85   : > { %2582 = vmatpush1.bf16.msra.mxu0 %v3783_v8  ;;  %v3851_v8 = vld [vmem:[%s4337_s29 + $0x784] ss:$20 sps:$4 sm:$0xff]  }
  0x86   : > { %2583 = vmatprep.subr.bf16.mxu0 %v3791_v9 }
  0x87   : > { %2551 = vmatpush2.bf16.msra.mxu1 %v3804_v14  ;;  %v3849_v14 = vld [vmem:[%s4337_s29 + $0x780] ss:$20 sps:$4 sm:$0xff]  }
  0x88   : > { %2552 = vmatprep.subr.bf16.mxu1 %v3812_v15 }
  0x89   : > { %2584 = vmatpush1.bf16.msra.mxu0 %v3789_v12 }
  0x8a   : > { %2585 = vmatprep.subr.bf16.mxu0 %v3797_v13  ;;  %v3846_v13 = vld [vmem:[%s4337_s29 + $0x5a0] ss:$20 sps:$4 sm:$0xff]  }
  0x8b   : > { %2553 = vmatpush2.bf16.msra.mxu1 %v3810_v18 }
  0x8c   : > { %2554 = vmatprep.subr.bf16.mxu1 %v3818_v20 }
  0x8d   : > { %2586 = vmatpush2.bf16.msra.mxu0 %v3795_v16  ;;  %v3854_v16 = vld [vmem:[%s4337_s29 + $0x57c] ss:$20 sps:$4 sm:$0xff]  }
  0x8e   : > { %2587 = vmatprep.subr.bf16.mxu0 %v3803_v17  ;;  %v3857_v17 = vld [vmem:[%s4337_s29 + $0x124] ss:$20 sps:$4 sm:$0xff]  }
  0x8f   : > { %2555 = vmatpush2.bf16.msra.mxu1 %v3816_v22  ;;  %v3855_v22 = vld [vmem:[%s4337_s29 + $0x120] ss:$20 sps:$4 sm:$0xff]  }
  0x90   : > { %2556 = vmatprep.subr.bf16.mxu1 %v3824_v24  ;;  %v3860_v24 = vld [vmem:[%s4337_s29 + $0x554] ss:$20 sps:$4 sm:$0xff]  }
  0x91   : > { %2588 = vmatpush2.bf16.msra.mxu0 %v3801_v19 }
  0x92   : > { %2589 = vmatprep.subr.bf16.mxu0 %v3809_v21  ;;  %v3852_v21 = vld [vmem:[%s4337_s29 + $0x578] ss:$20 sps:$4 sm:$0xff]  }
  0x93   : > { %2557 = vmatpush2.bf16.msra.mxu1 %v3822_v26  ;;  %v3858_v26 = vld [vmem:[%s4337_s29 + $0x550] ss:$20 sps:$4 sm:$0xff]  }
  0x94   : > { %2612 = vmatprep.subr.bf16.mxu1 %v3833_v28  ;;  %v3866_v28 = vld [vmem:[%s4337_s29 + $0x52c] ss:$20 sps:$4 sm:$0xff]  }
  0x95   : > { %2590 = vmatpush2.bf16.msra.mxu0 %v3807_v23 }
  0x96   : > { %2591 = vmatprep.subr.bf16.mxu0 %v3815_v25  ;;  %v3863_v25 = vld [vmem:[%s4337_s29 + $0xfc] ss:$20 sps:$4 sm:$0xff]  }
  0x99   : > { %2592 = vmatpush2.bf16.msra.mxu0 %v3813_v27  ;;  %v3861_v27 = vld [vmem:[%s4337_s29 + $0xf8] ss:$20 sps:$4 sm:$0xff]  }
  0x9a   : > { %2593 = vmatprep.subr.bf16.mxu0 %v3821_v29  ;;  %v3869_v29 = vld [vmem:[%s4337_s29 + $0xd4] ss:$20 sps:$4 sm:$0xff]  }
  0x9d   : > { %2594 = vmatpush2.bf16.msra.mxu0 %v3819_v30  ;;  %v3864_v30 = vld [vmem:[%s4337_s29 + $0x528] ss:$20 sps:$4 sm:$0xff]  }
  0x9e   : > { %2595 = vmatprep.subr.bf16.mxu0 %v3827_v31  ;;  %v3867_v31 = vld [vmem:[%s4337_s29 + $0xd0] ss:$20 sps:$4 sm:$0xff]  }
  0xa1   : > { %2596 = vmatpush2.bf16.msra.mxu0 %v3825_v32  ;;  %v3872_v32 = vld [vmem:[%s4337_s29 + $0x504] ss:$20 sps:$4 sm:$0xff]  }
  0xa2   : > { %2597 = vmatprep.subr.bf16.mxu0 %v3830_v33  ;;  %v3875_v33 = vld [vmem:[%s4337_s29 + $0xac] ss:$20 sps:$4 sm:$0xff]  }
  0xa5   : > { %2598 = vmatpush2.bf16.msra.mxu0 %v3828_v34  ;;  %v3870_v34 = vld [vmem:[%s4337_s29 + $0x500] ss:$20 sps:$4 sm:$0xff]  }
  0xa6   : > { %2599 = vmatprep.subr.bf16.mxu0 %v3836_v35  ;;  %v3873_v35 = vld [vmem:[%s4337_s29 + $0xa8] ss:$20 sps:$4 sm:$0xff]  }
  0xa9   : > { %2600 = vmatpush2.bf16.msra.mxu0 %v3834_v36  ;;  %v3878_v36 = vld [vmem:[%s4337_s29 + $0x75c] ss:$20 sps:$4 sm:$0xff]  }
  0xaa   : > { %2667 = vmatprep.subr.bf16.mxu0 %v3845_v37  ;;  %v3881_v37 = vld [vmem:[%s4337_s29 + $0x84] ss:$20 sps:$4 sm:$0xff]  }
 0x10c   : > { %v506_v38 = vpop.f32.mrf.mxu0 }
 0x10d   : > { %v642_v46 = vmax.f32 %v506_v38, 0.0  ;;  %v3876_v38 = vld [vmem:[%s4337_s29 + $0x758] ss:$20 sps:$4 sm:$0xff]  }
 0x10e   : > { %v508_v39 = vpop.f32.mrf.mxu0  ;;  %v635_v43 = vpop.f32.mrf.mxu1 }
 0x10f   : > { %v643_v44 = vmax.f32 %v508_v39, 0.0  ;;  %v648_v10 = vmax.f32 %v635_v43, 0.0  ;;  %v3879_v39 = vld [vmem:[%s4337_s29 + $0x80] ss:$20 sps:$4 sm:$0xff]   ;;  %v3885_v43 = vld [vmem:[%s4337_s29 + $0x58] ss:$20 sps:$4 sm:$0xff]  }
 0x110   : > { %v510_v40 = vpop.f32.mrf.mxu0  ;;  %v3623_v48 = vpop.f32.mrf.mxu1 }
 0x111   : > { %v649_v41 = vmax.f32 %v510_v40, 0.0  ;;  %v3884_v40 = vld [vmem:[%s4337_s29 + $0x734] ss:$20 sps:$4 sm:$0xff]   ;;  %v3896_v48 = vld [vmem:[%s4337_s29 + $0x6e4] ss:$20 sps:$4 sm:$0xff]  }
 0x112   : > { %v512_v42 = vpop.f32.mrf.mxu0  ;;  %v638_v54 = vpop.f32.mrf.mxu1 }
 0x113   : > { %v650_v45 = vmax.f32 %v512_v42, 0.0  ;;  %v4480_v51 = vpack.c.bf16 %v649_v41, %v642_v46  ;;  %v655_v11 = vmax.f32 %v638_v54, 0.0  ;;  %v3887_v41 = vld [vmem:[%s4337_s29 + $0x5c] ss:$20 sps:$4 sm:$0xff]  }
 0x114   : > { %v549_v47 = vpop.f32.mrf.mxu0  ;;  %v3624_v57 = vpop.f32.mrf.mxu1  ;;  %v3882_v42 = vld [vmem:[%s4337_s29 + $0x730] ss:$20 sps:$4 sm:$0xff]   ;;  %v3888_v46 = vld [vmem:[%s4337_s29 + $0x708] ss:$20 sps:$4 sm:$0xff]  }
 0x115   : > { %v4477_v49 = vpack.c.bf16 %v650_v45, %v643_v44  ;;  %v644_v55 = vmax.f32 %v549_v47, 0.0  ;;  %v4506_v20 = vpack.c.bf16 %v655_v11, %v648_v10  ;;  %v3890_v44 = vld [vmem:[%s4337_s29 + $0x70c] ss:$20 sps:$4 sm:$0xff]   ;;  %v3893_v45 = vld [vmem:[%s4337_s29 + $0x34] ss:$20 sps:$4 sm:$0xff]  }
 0x116   : > { %v551_v52 = vpop.f32.mrf.mxu0  ;;  %v3891_v47 = vld [vmem:[%s4337_s29 + $0x30] ss:$20 sps:$4 sm:$0xff]   ;;  %v3903_v57 = vld [vmem:[%s4337_s29 + $0x260] ss:$20 sps:$4 sm:$0xff]   ;;  %v3921_v10 = vld [vmem:[%s4337_s29 + $0x1e8] ss:$20 sps:$4 sm:$0xff]  }
 0x117   : > { %2558 = vmatprep.mubr.bf16.mxu1 %v4477_v49  ;;  %v645_v58 = vmax.f32 %v551_v52, 0.0  ;;  %v3894_v52 = vld [vmem:[%s4337_s29 + $0x6e0] ss:$20 sps:$4 sm:$0xff]   ;;  %v3902_v54 = vld [vmem:[%s4337_s29 + $0x6bc] ss:$20 sps:$4 sm:$0xff]  }
 0x118   : > { %v553_v56 = vpop.f32.mrf.mxu0  ;;  %2559 = vmatmul.mubr.bf16.vlgmr.msra.gmra.mxu1 %v4480_v51 }
 0x119   : > { %v651_v59 = vmax.f32 %v553_v56, 0.0  ;;  %2613 = vmatpush1.bf16.msra.mxu1 %v3831_v50  ;;  %v3899_v50 = vld [vmem:[%s4337_s29 + $0xc] ss:$20 sps:$4 sm:$0xff]  }
 0x11a   : > { %v555_v61 = vpop.f32.mrf.mxu0  ;;  %2614 = vmatprep.subr.bf16.mxu1 %v3839_v53  ;;  %v3897_v53 = vld [vmem:[%s4337_s29 + $0x8] ss:$20 sps:$4 sm:$0xff]   ;;  %v3900_v56 = vld [vmem:[%s4337_s29 + $0x6b8] ss:$20 sps:$4 sm:$0xff]  }
 0x11b   : > { %v652_v63 = vmax.f32 %v555_v61, 0.0  ;;  %v4487_v2 = vpack.c.bf16 %v651_v59, %v644_v55  ;;  %v3905_v55 = vld [vmem:[%s4337_s29 + $0x264] ss:$20 sps:$4 sm:$0xff]   ;;  %v3911_v59 = vld [vmem:[%s4337_s29 + $0x23c] ss:$20 sps:$4 sm:$0xff]  }
 0x11c   : > { %v4489_v3 = vpop.f32.mrf.mxu0  ;;  %v3909_v61 = vld [vmem:[%s4337_s29 + $0x238] ss:$20 sps:$4 sm:$0xff]  }
 0x11d   : > { %v4491_v4 = vpack.c.bf16 %v652_v63, %v645_v58  ;;  %2615 = vmatpush1.bf16.msra.mxu1 %v3837_v60  ;;  %v3908_v58 = vld [vmem:[%s4337_s29 + $0x694] ss:$20 sps:$4 sm:$0xff]   ;;  %v3906_v60 = vld [vmem:[%s4337_s29 + $0x690] ss:$20 sps:$4 sm:$0xff]   ;;  %v646_v11 = vmax.f32 %v4489_v3, 0.0 }
 0x11e   : > { %2616 = vmatprep.subr.bf16.mxu1 %v3842_v62  ;;  %v594_v9 = vpop.f32.mrf.mxu0  ;;  %v3914_v62 = vld [vmem:[%s4337_s29 + $0x66c] ss:$20 sps:$4 sm:$0xff]   ;;  %v3917_v63 = vld [vmem:[%s4337_s29 + $0x214] ss:$20 sps:$4 sm:$0xff]   ;;  %v3932_v3 = vld [vmem:[%s4337_s29 + $0x19c] ss:$20 sps:$4 sm:$0xff]  }
 0x11f   : > { %2601 = vmatprep.mubr.bf16.mxu0 %v4491_v4  ;;  %v647_v15 = vmax.f32 %v594_v9, 0.0  ;;  %v3918_v9 = vld [vmem:[%s4337_s29 + $0x640] ss:$20 sps:$4 sm:$0xff]  }
 0x120   : > { %2602 = vmatmul.mubr.bf16.vlgmr.msra.gmra.mxu0 %v4487_v2  ;;  %v4499_v12 = vpop.f32.mrf.mxu0 }
 0x121   : > { %2617 = vmatpush1.bf16.msra.mxu1 %v3840_v5  ;;  %2668 = vmatpush1.bf16.msra.mxu0 %v3843_v6  ;;  %v3912_v5 = vld [vmem:[%s4337_s29 + $0x668] ss:$20 sps:$4 sm:$0xff]   ;;  %v3915_v6 = vld [vmem:[%s4337_s29 + $0x210] ss:$20 sps:$4 sm:$0xff]  }
 0x122   : > { %2618 = vmatprep.subr.bf16.mxu1 %v3848_v7  ;;  %2669 = vmatprep.subr.bf16.mxu0 %v3851_v8  ;;  %v598_v18 = vpop.f32.mrf.mxu0  ;;  %v3920_v7 = vld [vmem:[%s4337_s29 + $0x644] ss:$20 sps:$4 sm:$0xff]   ;;  %v3923_v8 = vld [vmem:[%s4337_s29 + $0x1ec] ss:$20 sps:$4 sm:$0xff]  }
 0x123   : > { %2687 = vmatprep.mubr.bf16.mxu0 %v4209_v0  ;;  %v654_v19 = vmax.f32 %v598_v18, 0.0 }
 0x125   : > { %2619 = vmatpush1.bf16.msra.mxu1 %v3846_v13  ;;  %2670 = vmatpush1.bf16.msra.mxu0 %v3849_v14  ;;  %v4510_v23 = vpack.c.bf16 %v654_v19, %v647_v15  ;;  %v653_v13 = vmax.f32 %v4499_v12, 0.0  ;;  %v3926_v14 = vld [vmem:[%s4337_s29 + $0x1c4] ss:$20 sps:$4 sm:$0xff]   ;;  %v3935_v12 = vld [vmem:[%s4337_s29 + $0x37c] ss:$20 sps:$4 sm:$0xff]  }
 0x126   : > { %2620 = vmatprep.subr.bf16.mxu1 %v3854_v16  ;;  %2698 = vmatprep.subr.bf16.mxu0 %v3857_v17  ;;  %v3929_v15 = vld [vmem:[%s4337_s29 + $0x3a4] ss:$20 sps:$4 sm:$0xff]   ;;  %v3924_v16 = vld [vmem:[%s4337_s29 + $0x1c0] ss:$20 sps:$4 sm:$0xff]  }
 0x127   : > { %2644 = vmatprep.mubr.bf16.mxu1 %v4510_v23  ;;  %v3927_v17 = vld [vmem:[%s4337_s29 + $0x3a0] ss:$20 sps:$4 sm:$0xff]   ;;  %v4566_v18 = vpack.c.bf16 %v653_v13, %v646_v11  ;;  %v3930_v19 = vld [vmem:[%s4337_s29 + $0x198] ss:$20 sps:$4 sm:$0xff]   ;;  %v4007_v11 = vld [vmem:[%s4337_s29 + $0x73c] ss:$20 sps:$4 sm:$0xff]  }
 0x128   : > { %3536 = vmatmul.mubr.msk.bf16.vlgmr.msra.gmra.mxu0 %vm2522_vm6, %v4506_v20  ;;  %v4002_v13 = vld [vmem:[%s4337_s29 + $0x418] ss:$20 sps:$4 sm:$0xff]  }
 0x129   : > { %2621 = vmatpush1.bf16.msra.mxu1 %v3852_v21  ;;  %2699 = vmatpush1.bf16.msra.mxu0 %v3855_v22  ;;  %v3933_v21 = vld [vmem:[%s4337_s29 + $0x378] ss:$20 sps:$4 sm:$0xff]   ;;  %v3938_v22 = vld [vmem:[%s4337_s29 + $0x174] ss:$20 sps:$4 sm:$0xff]  }
 0x12a   : > { %2730 = vmatprep.mubr.bf16.mxu0 %v4477_v49  ;;  %2622 = vmatprep.subr.bf16.mxu1 %v3860_v24  ;;  %v3941_v24 = vld [vmem:[%s4337_s29 + $0x354] ss:$20 sps:$4 sm:$0xff]  }
 0x12b   : > { %2700 = vmatprep.subr.bf16.mxu0 %v3863_v25  ;;  %v3936_v25 = vld [vmem:[%s4337_s29 + $0x170] ss:$20 sps:$4 sm:$0xff]  }
 0x12d   : > { %2623 = vmatpush1.bf16.msra.mxu1 %v3858_v26  ;;  %2701 = vmatpush1.bf16.msra.mxu0 %v3861_v27  ;;  %v3939_v26 = vld [vmem:[%s4337_s29 + $0x350] ss:$20 sps:$4 sm:$0xff]   ;;  %v3944_v27 = vld [vmem:[%s4337_s29 + $0x14c] ss:$20 sps:$4 sm:$0xff]  }
 0x12e   : > { %2624 = vmatprep.subr.bf16.mxu1 %v3866_v28  ;;  %2702 = vmatprep.subr.bf16.mxu0 %v3869_v29  ;;  %v3947_v28 = vld [vmem:[%s4337_s29 + $0x32c] ss:$20 sps:$4 sm:$0xff]   ;;  %v3942_v29 = vld [vmem:[%s4337_s29 + $0x148] ss:$20 sps:$4 sm:$0xff]  }
 0x131   : > { %2625 = vmatpush1.bf16.msra.mxu1 %v3864_v30  ;;  %2703 = vmatpush1.bf16.msra.mxu0 %v3867_v31  ;;  %v3945_v30 = vld [vmem:[%s4337_s29 + $0x328] ss:$20 sps:$4 sm:$0xff]   ;;  %v3950_v31 = vld [vmem:[%s4337_s29 + $0x304] ss:$20 sps:$4 sm:$0xff]  }
 0x132   : > { %2626 = vmatprep.subr.bf16.mxu1 %v3872_v32  ;;  %2704 = vmatprep.subr.bf16.mxu0 %v3875_v33  ;;  %v3953_v32 = vld [vmem:[%s4337_s29 + $0x624] ss:$20 sps:$4 sm:$0xff]   ;;  %v3948_v33 = vld [vmem:[%s4337_s29 + $0x300] ss:$20 sps:$4 sm:$0xff]  }
 0x135   : > { %2627 = vmatpush1.bf16.msra.mxu1 %v3870_v34  ;;  %2705 = vmatpush1.bf16.msra.mxu0 %v3873_v35  ;;  %v3951_v34 = vld [vmem:[%s4337_s29 + $0x620] ss:$20 sps:$4 sm:$0xff]   ;;  %v3956_v35 = vld [vmem:[%s4337_s29 + $0x2dc] ss:$20 sps:$4 sm:$0xff]  }
 0x136   : > { %2628 = vmatprep.subr.bf16.mxu1 %v3878_v36  ;;  %2706 = vmatprep.subr.bf16.mxu0 %v3881_v37  ;;  %v3959_v36 = vld [vmem:[%s4337_s29 + $0x5fc] ss:$20 sps:$4 sm:$0xff]   ;;  %v3954_v37 = vld [vmem:[%s4337_s29 + $0x2d8] ss:$20 sps:$4 sm:$0xff]  }
 0x139   : > { %2629 = vmatpush2.bf16.msra.mxu1 %v3876_v38  ;;  %2707 = vmatpush1.bf16.msra.mxu0 %v3879_v39  ;;  %v3957_v38 = vld [vmem:[%s4337_s29 + $0x5f8] ss:$20 sps:$4 sm:$0xff]   ;;  %v3962_v39 = vld [vmem:[%s4337_s29 + $0x2b4] ss:$20 sps:$4 sm:$0xff]  }
 0x13a   : > { %2630 = vmatprep.subr.bf16.mxu1 %v3884_v40  ;;  %2708 = vmatprep.subr.bf16.mxu0 %v3887_v41  ;;  %v3965_v40 = vld [vmem:[%s4337_s29 + $0x5d4] ss:$20 sps:$4 sm:$0xff]   ;;  %v3960_v41 = vld [vmem:[%s4337_s29 + $0x2b0] ss:$20 sps:$4 sm:$0xff]  }
 0x13d   : > { %2631 = vmatpush2.bf16.msra.mxu1 %v3882_v42  ;;  %2709 = vmatpush1.bf16.msra.mxu0 %v3885_v43  ;;  %v3963_v42 = vld [vmem:[%s4337_s29 + $0x5d0] ss:$20 sps:$4 sm:$0xff]   ;;  %v3968_v43 = vld [vmem:[%s4337_s29 + $0x28c] ss:$20 sps:$4 sm:$0xff]  }
 0x13e   : > { %2632 = vmatprep.subr.bf16.mxu1 %v3890_v44  ;;  %2710 = vmatprep.subr.bf16.mxu0 %v3893_v45  ;;  %v3971_v44 = vld [vmem:[%s4337_s29 + $0x5ac] ss:$20 sps:$4 sm:$0xff]   ;;  %v3966_v45 = vld [vmem:[%s4337_s29 + $0x288] ss:$20 sps:$4 sm:$0xff]  }
 0x141   : > { %2633 = vmatpush2.bf16.msra.mxu1 %v3888_v46  ;;  %2711 = vmatpush1.bf16.msra.mxu0 %v3891_v47  ;;  %v3969_v46 = vld [vmem:[%s4337_s29 + $0x5a8] ss:$20 sps:$4 sm:$0xff]   ;;  %v3974_v47 = vld [vmem:[%s4337_s29 + $0x4e4] ss:$20 sps:$4 sm:$0xff]  }
 0x142   : > { %2634 = vmatprep.subr.bf16.mxu1 %v3896_v48  ;;  %2712 = vmatprep.subr.bf16.mxu0 %v3899_v50  ;;  %v3977_v48 = vld [vmem:[%s4337_s29 + $0x584] ss:$20 sps:$4 sm:$0xff]   ;;  %v3972_v50 = vld [vmem:[%s4337_s29 + $0x4e0] ss:$20 sps:$4 sm:$0xff]  }
 0x145   : > { %2635 = vmatpush2.bf16.msra.mxu1 %v3894_v52  ;;  %2713 = vmatpush1.bf16.msra.mxu0 %v3897_v53  ;;  %v3975_v52 = vld [vmem:[%s4337_s29 + $0x580] ss:$20 sps:$4 sm:$0xff]   ;;  %v3980_v53 = vld [vmem:[%s4337_s29 + $0x4bc] ss:$20 sps:$4 sm:$0xff]  }
 0x146   : > { %2636 = vmatprep.subr.bf16.mxu1 %v3902_v54  ;;  %2714 = vmatprep.subr.bf16.mxu0 %v3905_v55  ;;  %v3983_v54 = vld [vmem:[%s4337_s29 + $0x55c] ss:$20 sps:$4 sm:$0xff]   ;;  %v3978_v55 = vld [vmem:[%s4337_s29 + $0x4b8] ss:$20 sps:$4 sm:$0xff]  }
 0x149   : > { %2637 = vmatpush2.bf16.msra.mxu1 %v3900_v56  ;;  %2715 = vmatpush2.bf16.msra.mxu0 %v3903_v57  ;;  %v3981_v56 = vld [vmem:[%s4337_s29 + $0x558] ss:$20 sps:$4 sm:$0xff]   ;;  %v3986_v57 = vld [vmem:[%s4337_s29 + $0x494] ss:$20 sps:$4 sm:$0xff]  }
 0x14a   : > { %2638 = vmatprep.subr.bf16.mxu1 %v3908_v58  ;;  %2716 = vmatprep.subr.bf16.mxu0 %v3911_v59  ;;  %v3989_v58 = vld [vmem:[%s4337_s29 + $0x534] ss:$20 sps:$4 sm:$0xff]   ;;  %v3984_v59 = vld [vmem:[%s4337_s29 + $0x490] ss:$20 sps:$4 sm:$0xff]  }
 0x14d   : > { %2639 = vmatpush2.bf16.msra.mxu1 %v3906_v60  ;;  %2717 = vmatpush2.bf16.msra.mxu0 %v3909_v61  ;;  %v3987_v60 = vld [vmem:[%s4337_s29 + $0x530] ss:$20 sps:$4 sm:$0xff]   ;;  %v3992_v61 = vld [vmem:[%s4337_s29 + $0x46c] ss:$20 sps:$4 sm:$0xff]  }
 0x14e   : > { %2640 = vmatprep.subr.bf16.mxu1 %v3914_v62  ;;  %2718 = vmatprep.subr.bf16.mxu0 %v3917_v63  ;;  %v3995_v62 = vld [vmem:[%s4337_s29 + $0x50c] ss:$20 sps:$4 sm:$0xff]   ;;  %v3990_v63 = vld [vmem:[%s4337_s29 + $0x468] ss:$20 sps:$4 sm:$0xff]  }
 0x151   : > { %2641 = vmatpush2.bf16.msra.mxu1 %v3912_v5  ;;  %2719 = vmatpush2.bf16.msra.mxu0 %v3915_v6  ;;  %v3993_v5 = vld [vmem:[%s4337_s29 + $0x508] ss:$20 sps:$4 sm:$0xff]   ;;  %v3998_v6 = vld [vmem:[%s4337_s29 + $0x444] ss:$20 sps:$4 sm:$0xff]  }
 0x152   : > { %2642 = vmatprep.subr.bf16.mxu1 %v3920_v7  ;;  %2720 = vmatprep.subr.bf16.mxu0 %v3923_v8  ;;  %v4001_v7 = vld [vmem:[%s4337_s29 + $0x764] ss:$20 sps:$4 sm:$0xff]   ;;  %v3996_v8 = vld [vmem:[%s4337_s29 + $0x440] ss:$20 sps:$4 sm:$0xff]  }
 0x155   : > { %2643 = vmatpush2.bf16.msra.mxu1 %v3918_v9  ;;  %2721 = vmatpush2.bf16.msra.mxu0 %v3921_v10  ;;  %v3999_v9 = vld [vmem:[%s4337_s29 + $0x760] ss:$20 sps:$4 sm:$0xff]   ;;  %v4004_v10 = vld [vmem:[%s4337_s29 + $0x41c] ss:$20 sps:$4 sm:$0xff]  }
 0x156   : > { %2722 = vmatprep.subr.bf16.mxu0 %v3926_v14  ;;  %2741 = vmatprep.subr.bf16.mxu1 %v3929_v15  ;;  %v4005_v14 = vld [vmem:[%s4337_s29 + $0x738] ss:$20 sps:$4 sm:$0xff]   ;;  %v4010_v15 = vld [vmem:[%s4337_s29 + $0x3f4] ss:$20 sps:$4 sm:$0xff]  }
 0x158   : > { %2645 = vmatmul.mubr.bf16.vlgmr.msra.gmra.mxu1 %v4566_v18 }
 0x159   : > { %2723 = vmatpush2.bf16.msra.mxu0 %v3924_v16  ;;  %2742 = vmatpush1.bf16.msra.mxu1 %v3927_v17  ;;  %v4013_v16 = vld [vmem:[%s4337_s29 + $0x714] ss:$20 sps:$4 sm:$0xff]   ;;  %v4008_v17 = vld [vmem:[%s4337_s29 + $0x3f0] ss:$20 sps:$4 sm:$0xff]  }
 0x15a   : > { %2773 = vmatprep.mubr.bf16.mxu1 %v4491_v4  ;;  %2724 = vmatprep.subr.bf16.mxu0 %v3932_v3  ;;  %v4011_v3 = vld [vmem:[%s4337_s29 + $0x710] ss:$20 sps:$4 sm:$0xff]  }
 0x15b   : > { %2743 = vmatprep.subr.bf16.mxu1 %v3935_v12  ;;  %v4016_v12 = vld [vmem:[%s4337_s29 + $0x3cc] ss:$20 sps:$4 sm:$0xff]  }
 0x15d   : > { %2725 = vmatpush2.bf16.msra.mxu0 %v3930_v19  ;;  %2744 = vmatpush1.bf16.msra.mxu1 %v3933_v21  ;;  %v4019_v19 = vld [vmem:[%s4337_s29 + $0x6ec] ss:$20 sps:$4 sm:$0xff]   ;;  %v4014_v21 = vld [vmem:[%s4337_s29 + $0x3c8] ss:$20 sps:$4 sm:$0xff]  }
 0x15e   : > { %2726 = vmatprep.subr.bf16.mxu0 %v3938_v22  ;;  %2745 = vmatprep.subr.bf16.mxu1 %v3941_v24  ;;  %v4017_v22 = vld [vmem:[%s4337_s29 + $0x6e8] ss:$20 sps:$4 sm:$0xff]   ;;  %v4022_v24 = vld [vmem:[%s4337_s29 + $0x6c4] ss:$20 sps:$4 sm:$0xff]  }
 0x161   : > { %2727 = vmatpush2.bf16.msra.mxu0 %v3936_v25  ;;  %2746 = vmatpush1.bf16.msra.mxu1 %v3939_v26  ;;  %v4025_v25 = vld [vmem:[%s4337_s29 + $0x7b4] ss:$20 sps:$4 sm:$0xff]  }
 0x162   : > { %2728 = vmatprep.subr.bf16.mxu0 %v3944_v27  ;;  %2747 = vmatprep.subr.bf16.mxu1 %v3947_v28  ;;  %v4020_v26 = vld [vmem:[%s4337_s29 + $0x6c0] ss:$20 sps:$4 sm:$0xff]   ;;  %v4023_v27 = vld [vmem:[%s4337_s29 + $0x7b0] ss:$20 sps:$4 sm:$0xff]  }
 0x163   : > { %v4028_v28 = vld [vmem:[%s4337_s29 + $0x69c] ss:$20 sps:$4 sm:$0xff]  }
 0x165   : > { %2729 = vmatpush2.bf16.msra.mxu0 %v3942_v29  ;;  %2748 = vmatpush1.bf16.msra.mxu1 %v3945_v30  ;;  %v4031_v29 = vld [vmem:[%s4337_s29 + $0x78c] ss:$20 sps:$4 sm:$0xff]  }
 0x166   : > { %2749 = vmatprep.subr.bf16.mxu1 %v3950_v31  ;;  %2784 = vmatprep.subr.bf16.mxu0 %v3953_v32  ;;  %v4026_v30 = vld [vmem:[%s4337_s29 + $0x698] ss:$20 sps:$4 sm:$0xff]   ;;  %v4029_v31 = vld [vmem:[%s4337_s29 + $0x788] ss:$20 sps:$4 sm:$0xff]  }
 0x167   : > { %v4034_v32 = vld [vmem:[%s4337_s29 + $0x674] ss:$20 sps:$4 sm:$0xff]  }
 0x168   : > { %2731 = vmatmul.mubr.bf16.vlgmr.msra.gmra.mxu0 %v4480_v51 }
 0x169   : > { %2750 = vmatpush1.bf16.msra.mxu1 %v3948_v33  ;;  %2785 = vmatpush1.bf16.msra.mxu0 %v3951_v34  ;;  %v4035_v33 = vld [vmem:[%s4337_s29 + $0x268] ss:$20 sps:$4 sm:$0xff]   ;;  %v4032_v34 = vld [vmem:[%s4337_s29 + $0x670] ss:$20 sps:$4 sm:$0xff]  }
 0x16a   : > { %2816 = vmatprep.mubr.bf16.mxu0 %v4510_v23  ;;  %2751 = vmatprep.subr.bf16.mxu1 %v3956_v35  ;;  %v4036_v35 = vld [vmem:[%s4337_s29 + $0x128] ss:$20 sps:$4 sm:$0xff]  }
 0x16b   : > { %2786 = vmatprep.subr.bf16.mxu0 %v3959_v36  ;;  %v4039_v36 = vld [vmem:[%s4337_s29 + $0x64c] ss:$20 sps:$4 sm:$0xff]  }
 0x16d   : > { %2752 = vmatpush1.bf16.msra.mxu1 %v3954_v37  ;;  %2787 = vmatpush1.bf16.msra.mxu0 %v3957_v38  ;;  %v4040_v37 = vld [vmem:[%s4337_s29 + $0x240] ss:$20 sps:$4 sm:$0xff]  }
 0x16e   : > { %2753 = vmatprep.subr.bf16.mxu1 %v3962_v39  ;;  %2788 = vmatprep.subr.bf16.mxu0 %v3965_v40  ;;  %v4041_v38 = vld [vmem:[%s4337_s29 + $0x100] ss:$20 sps:$4 sm:$0xff]   ;;  %v4042_v39 = vld [vmem:[%s4337_s29 + $0x218] ss:$20 sps:$4 sm:$0xff]   ;;  %v4043_v40 = vld [vmem:[%s4337_s29 + $0x4e8] ss:$20 sps:$4 sm:$0xff]  }
 0x171   : > { %2754 = vmatpush1.bf16.msra.mxu1 %v3960_v41  ;;  %2789 = vmatpush1.bf16.msra.mxu0 %v3963_v42  ;;  %v4044_v41 = vld [vmem:[%s4337_s29 + $0xd8] ss:$20 sps:$4 sm:$0xff]   ;;  %v4045_v42 = vld [vmem:[%s4337_s29 + $0x3a8] ss:$20 sps:$4 sm:$0xff]  }
 0x172   : > { %2755 = vmatprep.subr.bf16.mxu1 %v3968_v43  ;;  %2790 = vmatprep.subr.bf16.mxu0 %v3971_v44  ;;  %v4046_v43 = vld [vmem:[%s4337_s29 + $0x1f0] ss:$20 sps:$4 sm:$0xff]   ;;  %v4047_v44 = vld [vmem:[%s4337_s29 + $0x4c0] ss:$20 sps:$4 sm:$0xff]  }
 0x175   : > { %2756 = vmatpush1.bf16.msra.mxu1 %v3966_v45  ;;  %2791 = vmatpush1.bf16.msra.mxu0 %v3969_v46  ;;  %v4049_v45 = vld [vmem:[%s4337_s29 + $0x380] ss:$20 sps:$4 sm:$0xff]   ;;  %v4050_v46 = vld [vmem:[%s4337_s29 + $0x1c8] ss:$20 sps:$4 sm:$0xff]  }
 0x176   : > { %2757 = vmatprep.subr.bf16.mxu1 %v3974_v47  ;;  %2792 = vmatprep.subr.bf16.mxu0 %v3977_v48  ;;  %v4051_v47 = vld [vmem:[%s4337_s29 + $0x498] ss:$20 sps:$4 sm:$0xff]   ;;  %v4052_v48 = vld [vmem:[%s4337_s29 + $0x88] ss:$20 sps:$4 sm:$0xff]  }
 0x179   : > { %2758 = vmatpush2.bf16.msra.mxu1 %v3972_v50  ;;  %2793 = vmatpush1.bf16.msra.mxu0 %v3975_v52  ;;  %v4053_v50 = vld [vmem:[%s4337_s29 + $0x358] ss:$20 sps:$4 sm:$0xff]   ;;  %v4054_v52 = vld [vmem:[%s4337_s29 + $0x1a0] ss:$20 sps:$4 sm:$0xff]  }
 0x17a   : > { %2759 = vmatprep.subr.bf16.mxu1 %v3980_v53  ;;  %2794 = vmatprep.subr.bf16.mxu0 %v3983_v54  ;;  %v4055_v53 = vld [vmem:[%s4337_s29 + $0x470] ss:$20 sps:$4 sm:$0xff]  }
 0x17b   : > { %v4057_v54 = vld [vmem:[%s4337_s29 + $0x330] ss:$20 sps:$4 sm:$0xff]  }
 0x17d   : > { %2760 = vmatpush2.bf16.msra.mxu1 %v3978_v55  ;;  %2795 = vmatpush1.bf16.msra.mxu0 %v3981_v56  ;;  %v4058_v55 = vld [vmem:[%s4337_s29 + $0x178] ss:$20 sps:$4 sm:$0xff]   ;;  %v4059_v56 = vld [vmem:[%s4337_s29 + $0x448] ss:$20 sps:$4 sm:$0xff]  }
 0x17e   : > { %2761 = vmatprep.subr.bf16.mxu1 %v3986_v57  ;;  %2796 = vmatprep.subr.bf16.mxu0 %v3989_v58  ;;  %v4060_v57 = vld [vmem:[%s4337_s29 + $0x38] ss:$20 sps:$4 sm:$0xff]   ;;  %v4061_v58 = vld [vmem:[%s4337_s29 + $0x308] ss:$20 sps:$4 sm:$0xff]  }
 0x181   : > { %2762 = vmatpush2.bf16.msra.mxu1 %v3984_v59  ;;  %2797 = vmatpush1.bf16.msra.mxu0 %v3987_v60  ;;  %v4062_v59 = vld [vmem:[%s4337_s29 + $0x150] ss:$20 sps:$4 sm:$0xff]   ;;  %v4063_v60 = vld [vmem:[%s4337_s29 + $0x420] ss:$20 sps:$4 sm:$0xff]  }
 0x182   : > { %2763 = vmatprep.subr.bf16.mxu1 %v3992_v61  ;;  %2798 = vmatprep.subr.bf16.mxu0 %v3995_v62  ;;  %v4064_v61 = vld [vmem:[%s4337_s29 + $0x10] ss:$20 sps:$4 sm:$0xff]   ;;  %v4065_v62 = vld [vmem:[%s4337_s29 + $0x2e0] ss:$20 sps:$4 sm:$0xff]  }
 0x185   : > { %2764 = vmatpush2.bf16.msra.mxu1 %v3990_v63  ;;  %2799 = vmatpush1.bf16.msra.mxu0 %v3993_v5  ;;  %v4066_v63 = vld [vmem:[%s4337_s29 + $0x3f8] ss:$20 sps:$4 sm:$0xff]   ;;  %v4067_v5 = vld [vmem:[%s4337_s29 + $0x768] ss:$20 sps:$4 sm:$0xff]  }
 0x186   : > { %2765 = vmatprep.subr.bf16.mxu1 %v3998_v6  ;;  %2800 = vmatprep.subr.bf16.mxu0 %v4001_v7  ;;  %v4068_v6 = vld [vmem:[%s4337_s29 + $0x2b8] ss:$20 sps:$4 sm:$0xff]   ;;  %v4069_v7 = vld [vmem:[%s4337_s29 + $0x628] ss:$20 sps:$4 sm:$0xff]  }
 0x189   : > { %2766 = vmatpush2.bf16.msra.mxu1 %v3996_v8  ;;  %2801 = vmatpush2.bf16.msra.mxu0 %v3999_v9  ;;  %v4070_v8 = vld [vmem:[%s4337_s29 + $0x3d0] ss:$20 sps:$4 sm:$0xff]   ;;  %v4071_v9 = vld [vmem:[%s4337_s29 + $0x740] ss:$20 sps:$4 sm:$0xff]  }
 0x18a   : > { %2767 = vmatprep.subr.bf16.mxu1 %v4004_v10  ;;  %2802 = vmatprep.subr.bf16.mxu0 %v4007_v11  ;;  %v4072_v10 = vld [vmem:[%s4337_s29 + $0x290] ss:$20 sps:$4 sm:$0xff]   ;;  %v4073_v11 = vld [vmem:[%s4337_s29 + $0x600] ss:$20 sps:$4 sm:$0xff]  }
 0x18d   : > { %2768 = vmatpush2.bf16.msra.mxu1 %v4002_v13  ;;  %2803 = vmatpush2.bf16.msra.mxu0 %v4005_v14  ;;  %v4074_v13 = vld [vmem:[%s4337_s29 + $0x718] ss:$20 sps:$4 sm:$0xff]  }
 0x18e   : > { %2769 = vmatprep.subr.bf16.mxu1 %v4010_v15  ;;  %2804 = vmatprep.subr.bf16.mxu0 %v4013_v16  ;;  %v4075_v14 = vld [vmem:[%s4337_s29 + $0x5d8] ss:$20 sps:$4 sm:$0xff]   ;;  %v4079_v16 = vld [vmem:[%s4337_s29 + $0x790] ss:$20 sps:$4 sm:$0xff]  }
 0x18f   : > { %v4076_v15 = vld [vmem:[%s4337_s29 + $0x7b8] ss:$20 sps:$4 sm:$0xff]  }
 0x191   : > { %2770 = vmatpush2.bf16.msra.mxu1 %v4008_v17  ;;  %2805 = vmatpush2.bf16.msra.mxu0 %v4011_v3  ;;  %v4080_v17 = vld [vmem:[%s4337_s29 + $0x6c8] ss:$20 sps:$4 sm:$0xff]  }
 0x192   : > { %2771 = vmatprep.subr.bf16.mxu1 %v4016_v12  ;;  %2806 = vmatprep.subr.bf16.mxu0 %v4019_v19  ;;  %v4081_v3 = vld [vmem:[%s4337_s29 + $0x588] ss:$20 sps:$4 sm:$0xff]   ;;  %v4083_v12 = vld [vmem:[%s4337_s29 + $0x560] ss:$20 sps:$4 sm:$0xff]   ;;  %v4084_v19 = vld [vmem:[%s4337_s29 + $0x678] ss:$20 sps:$4 sm:$0xff]  }
 0x195   : > { %2772 = vmatpush2.bf16.msra.mxu1 %v4014_v21  ;;  %2807 = vmatpush2.bf16.msra.mxu0 %v4017_v22  ;;  %v4085_v21 = vld [vmem:[%s4337_s29 + $0x538] ss:$20 sps:$4 sm:$0xff]   ;;  %v4086_v22 = vld [vmem:[%s4337_s29 + $0x650] ss:$20 sps:$4 sm:$0xff]  }
 0x196   : > { %2808 = vmatprep.subr.bf16.mxu0 %v4022_v24  ;;  %2839 = vmatprep.subr.bf16.mxu1 %v4025_v25  ;;  %v4087_v24 = vld [vmem:[%s4337_s29 + $0x510] ss:$20 sps:$4 sm:$0xff]  }
 0x198   : > { %2774 = vmatmul.mubr.bf16.vlgmr.msra.gmra.mxu1 %v4487_v2 }
 0x199   : > { %2809 = vmatpush2.bf16.msra.mxu0 %v4020_v26  ;;  %2840 = vmatpush1.bf16.msra.mxu1 %v4023_v27  ;;  %v1136_v26 = vpop.f32.mrf.mxu1 }
 0x19a   : > { %2810 = vmatprep.subr.bf16.mxu0 %v4028_v28  ;;  %2841 = vmatprep.subr.bf16.mxu1 %v4031_v29 }
 0x19b   : > { %2859 = vmatprep.mubr.bf16.mxu1 %v4209_v0  ;;  %v4037_v0 = vld [vmem:[%s4337_s29 + $0x648] ss:$20 sps:$4 sm:$0xff]   ;;  %v1138_v28 = vpop.f32.mrf.mxu1 }
 0x19d   : > { %2811 = vmatpush2.bf16.msra.mxu0 %v4026_v30  ;;  %2842 = vmatpush1.bf16.msra.mxu1 %v4029_v31  ;;  %v1142_v29 = vpop.f32.mrf.mxu1 }
 0x19e   : > { %2812 = vmatprep.subr.bf16.mxu0 %v4034_v32  ;;  %3548 = vmatprep.subr.bf16.mxu1 %v4035_v33 }
 0x19f   : > { %v4713_v31 = vpop.f32.mrf.mxu1 }
 0x1a0   : > { %3537 = vmatmul.mubr.msk.bf16.vlgmr.msra.gmra.mxu1 %vm2522_vm6, %v4506_v20 }
 0x1a1   : > { %2813 = vmatpush2.bf16.msra.mxu0 %v4032_v34  ;;  %3549 = vmatpush3.bf16.msra.mxu1 %v4036_v35 }
 0x1a2   : > { %2902 = vmatprep.mubr.bf16.mxu1 %v4477_v49  ;;  %2814 = vmatprep.subr.bf16.mxu0 %v4039_v36  ;;  %v4048_v49 = vld [vmem:[%s4337_s29 + $0xb0] ss:$20 sps:$4 sm:$0xff]  }
 0x1a3   : > { %3550 = vmatprep.subr.bf16.mxu1 %v4040_v37 }
 0x1a5   : > { %2815 = vmatpush2.bf16.msra.mxu0 %v4037_v0  ;;  %3551 = vmatpush3.bf16.msra.mxu1 %v4041_v38 }
 0x1a6   : > { %3552 = vmatprep.subr.bf16.mxu1 %v4042_v39  ;;  %3570 = vmatprep.subr.bf16.mxu0 %v4043_v40 }
 0x1a8   : > { %2817 = vmatmul.mubr.bf16.vlgmr.msra.gmra.mxu0 %v4566_v18 }
 0x1a9   : > { %3553 = vmatpush3.bf16.msra.mxu1 %v4044_v41  ;;  %3571 = vmatpush3.bf16.msra.mxu0 %v4045_v42 }
 0x1aa   : > { %2943 = vmatprep.mubr.bf16.mxu0 %v4491_v4  ;;  %3554 = vmatprep.subr.bf16.mxu1 %v4046_v43  ;;  %v4056_v4 = vld [vmem:[%s4337_s29 + $0x60] ss:$20 sps:$4 sm:$0xff]  }
 0x1ab   : > { %3572 = vmatprep.subr.bf16.mxu0 %v4047_v44 }
 0x1ad   : > { %3555 = vmatpush3.bf16.msra.mxu1 %v4048_v49  ;;  %3573 = vmatpush3.bf16.msra.mxu0 %v4049_v45 }
 0x1ae   : > { %3556 = vmatprep.subr.bf16.mxu1 %v4050_v46  ;;  %3574 = vmatprep.subr.bf16.mxu0 %v4051_v47 }
 0x1b1   : > { %3557 = vmatpush3.bf16.msra.mxu1 %v4052_v48  ;;  %3575 = vmatpush3.bf16.msra.mxu0 %v4053_v50 }
 0x1b2   : > { %3558 = vmatprep.subr.bf16.mxu1 %v4054_v52  ;;  %3576 = vmatprep.subr.bf16.mxu0 %v4055_v53  ;;  %v3044_v52 = vlaneseq }
 0x1b5   : > { %3559 = vmatpush3.bf16.msra.mxu1 %v4056_v4  ;;  %3577 = vmatpush3.bf16.msra.mxu0 %v4057_v54 }
 0x1b6   : > { %3560 = vmatprep.subr.bf16.mxu1 %v4058_v55  ;;  %3578 = vmatprep.subr.bf16.mxu0 %v4059_v56 }
 0x1b9   : > { %3561 = vmatpush3.bf16.msra.mxu1 %v4060_v57  ;;  %3579 = vmatpush3.bf16.msra.mxu0 %v4061_v58 }
 0x1ba   : > { %3562 = vmatprep.subr.bf16.mxu1 %v4062_v59  ;;  %3580 = vmatprep.subr.bf16.mxu0 %v4063_v60  ;;  %v4717_v59 = vshrl.u32 %v3044_v52, 7 }
 0x1bd   : > { %3563 = vmatpush3.bf16.msra.mxu1 %v4064_v61  ;;  %3581 = vmatpush3.bf16.msra.mxu0 %v4065_v62 }
 0x1be   : > { %3582 = vmatprep.subr.bf16.mxu0 %v4066_v63  ;;  %3592 = vmatprep.subr.bf16.mxu1 %v4067_v5 }
 0x1c0   : > { %2903 = vmatmul.mubr.bf16.vlgmr.msra.gmra.mxu1 %v4480_v51  ;;  %v4077_v51 = vld [vmem:[%s4337_s29 + $0x6f0] ss:$20 sps:$4 sm:$0xff]  }
 0x1c1   : > { %3583 = vmatpush3.bf16.msra.mxu0 %v4068_v6  ;;  %3593 = vmatpush3.bf16.msra.mxu1 %v4069_v7 }
 0x1c2   : > { %2984 = vmatprep.mubr.bf16.mxu1 %v4510_v23  ;;  %3584 = vmatprep.subr.bf16.mxu0 %v4070_v8  ;;  %v4078_v23 = vld [vmem:[%s4337_s29 + $0x5b0] ss:$20 sps:$4 sm:$0xff]  }
 0x1c3   : > { %3594 = vmatprep.subr.bf16.mxu1 %v4071_v9  ;;  %v4720_v9 = vsub.s32 3, %v4717_v59 }
 0x1c5   : > { %3585 = vmatpush3.bf16.msra.mxu0 %v4072_v10  ;;  %3595 = vmatpush3.bf16.msra.mxu1 %v4073_v11 }
 0x1c6   : > { %3596 = vmatprep.subr.bf16.mxu1 %v4074_v13  ;;  %3630 = vmatprep.subr.bf16.mxu0 %v4210_v1 }
 0x1c8   : > { %2944 = vmatmul.mubr.bf16.vlgmr.msra.gmra.mxu0 %v4487_v2  ;;  %v4082_v2 = vld [vmem:[%s4337_s29 + $0x6a0] ss:$20 sps:$4 sm:$0xff]  }
 0x1c9   : > { %3597 = vmatpush3.bf16.msra.mxu1 %v4075_v14  ;;  %3631 = vmatpush3.bf16.msra.mxu0 %v4076_v15  ;;  %v4088_v15 = vld [vmem:[%s4370_s8 + $0x8] sm:$0x1f] }
 0x1ca   : > { %3598 = vmatprep.subr.bf16.mxu1 %v4077_v51  ;;  %3632 = vmatprep.subr.bf16.mxu0 %v4210_v1  ;;  %v3051_v51 = vrot.slane %v4088_v15, %v4720_v9 }
 0x1cb   : > { %3634 = vmatprep.mubr.msk.bf16.mxu0 %vm4211_vm1, %v4210_v1  ;;  %v1059_v1 = vpop.f32.mrf.mxu0 }
 0x1cd   : > { %3599 = vmatpush3.bf16.msra.mxu1 %v4078_v23  ;;  %3633 = vmatpush3.bf16.msra.mxu0 %v4079_v16  ;;  %v1061_v25 = vpop.f32.mrf.mxu0 }
 0x1ce   : > { %3600 = vmatprep.subr.bf16.mxu1 %v4080_v17 }
 0x1cf   : > { %v1065_v27 = vpop.f32.mrf.mxu0 }
 0x1d0   : > { %3635 = vmatmul.mubr.msk.bf16.vlgmr.msra.gmra.mxu0 %vm2522_vm6, %v4506_v20 }
 0x1d1   : > { %3601 = vmatpush3.bf16.msra.mxu1 %v4081_v3  ;;  %v1067_v20 = vpop.f32.mrf.mxu0 }
 0x1d2   : > { %3602 = vmatprep.subr.bf16.mxu1 %v4082_v2 }
 0x1d3   : > { %v4711_v30 = vpop.f32.mrf.mxu0 }
 0x1d5   : > { %3603 = vmatpush3.bf16.msra.mxu1 %v4083_v12  ;;  %v4715_v32 = vpop.f32.mrf.mxu0 }
 0x1d6   : > { %3604 = vmatprep.subr.bf16.mxu1 %v4084_v19  ;;  %v4725_v19 = vld [vmem:[%s4370_s8] sm:$0x1f] }
 0x1d8   : > { %v2560_v33 = vpop.f32.mrf.mxu1 }
 0x1d9   : > { %3605 = vmatpush3.bf16.msra.mxu1 %v4085_v21  ;;  %v2561_v53 = vadd.f32 %v2560_v33, %v1059_v1  ;;  %v3047_v21 = vrot.slane %v4725_v19, %v4720_v9 }
 0x1da   : > { %3606 = vmatprep.subr.bf16.mxu1 %v4086_v22  ;;  %v2562_v35 = vpop.f32.mrf.mxu1 }
 0x1db   : > { %v2563_v47 = vadd.f32 %v2562_v35, %v1061_v25 }
 0x1dc   : > { %v2564_v37 = vpop.f32.mrf.mxu1 }
 0x1dd   : > { %3607 = vmatpush3.bf16.msra.mxu1 %v4087_v24  ;;  %v2565_v60 = vadd.f32 %v2564_v37, %v1065_v27 }
 0x1e0   : > { %2985 = vmatmul.mubr.bf16.vlgmr.msra.gmra.mxu1 %v4566_v18  ;;  %v2603_v34 = vpop.f32.mrf.mxu0  ;;  %v2566_v18 = vpop.f32.mrf.mxu1 }
 0x1e1   : > { %v2567_v55 = vadd.f32 %v2566_v18, %v1067_v20  ;;  %v2604_v56 = vadd.f32 %v2603_v34, %v2561_v53  ;;  %v4090_v20 = vld [vmem:[%s4370_s8 + $0x10] sm:$0x1f] }
 0x1e2   : > { %v2605_v36 = vpop.f32.mrf.mxu0  ;;  %v3055_v33 = vrot.slane %v4090_v20, %v4720_v9 }
 0x1e3   : > { %v2606_v4 = vadd.f32 %v2605_v36, %v2563_v47 }
 0x1e4   : > { %v2607_v0 = vpop.f32.mrf.mxu0 }
 0x1e5   : > { %v2608_v5 = vadd.f32 %v2607_v0, %v2565_v60 }
 0x1e6   : > { %v2609_v38 = vpop.f32.mrf.mxu0 }
 0x1e7   : > { %v2610_v61 = vadd.f32 %v2609_v38, %v2567_v55  ;;  %v4091_v38 = vld [vmem:[%s4370_s8 + $0x18] sm:$0x1f] }
 0x1e8   : > { %v2689_v40 = vpop.f32.mrf.mxu0 }
 0x1ea   : > { %v2691_v42 = vpop.f32.mrf.mxu0 }
 0x1ec   : > { %v2693_v44 = vpop.f32.mrf.mxu0 }
 0x1ee   : > { %v2695_v45 = vpop.f32.mrf.mxu0 }
 0x218   : > { %v2646_v39 = vpop.f32.mrf.mxu1 }
 0x219   : > { %v2647_v62 = vadd.f32 %v2646_v39, %v2604_v56  ;;  %v3059_v39 = vrot.slane %v4091_v38, %v4720_v9 }
 0x21a   : > { %v2648_v41 = vpop.f32.mrf.mxu1 }
 0x21b   : > { %v2649_v57 = vadd.f32 %v2648_v41, %v2606_v4  ;;  %v2690_v10 = vadd.f32 %v2689_v40, %v2647_v62 }
 0x21c   : > { %v2650_v43 = vpop.f32.mrf.mxu1 }
 0x21d   : > { %v2692_v6 = vadd.f32 %v2691_v42, %v2649_v57  ;;  %v2651_v11 = vadd.f32 %v2650_v43, %v2608_v5  ;;  %v3034_v12 = vmax.f32 %v2690_v10, 0.0 }
 0x21e   : > { %v2652_v49 = vpop.f32.mrf.mxu1 }
 0x21f   : > { %v2653_v7 = vadd.f32 %v2652_v49, %v2610_v61  ;;  %v3035_v23 = vmax.f32 %v2692_v6, 0.0  ;;  %v2694_v22 = vadd.f32 %v2693_v44, %v2651_v11  ;;  %v3064_v40 = vmul.f32 %v3047_v21, %v3034_v12 }
 0x221   : > { %v2696_v16 = vadd.f32 %v2695_v45, %v2653_v7  ;;  %v3065_v34 = vmul.f32 %v3051_v51, %v3035_v23  ;;  %v3039_v41 = vmax.f32 %v2694_v22, 0.0 }
 0x223   : > { %v3040_v35 = vmax.f32 %v2696_v16, 0.0  ;;  %v3069_v4 = vmul.f32 %v3047_v21, %v3039_v41 }
 0x228   : > { %v2732_v48 = vpop.f32.mrf.mxu0 }
 0x229   : > { %v2733_v14 = vadd.f32 %v2732_v48, %v1136_v26  ;;  %v3074_v48 = vadd.f32 %v3065_v34, %v3064_v40 }
 0x22a   : > { %v2734_v58 = vpop.f32.mrf.mxu0 }
 0x22b   : > { %v2735_v3 = vadd.f32 %v2734_v58, %v1138_v28 }
 0x22c   : > { %v2736_v8 = vpop.f32.mrf.mxu0 }
 0x22d   : > { %v2737_v25 = vadd.f32 %v2736_v8, %v1142_v29 }
 0x22e   : > { %v2738_v17 = vpop.f32.mrf.mxu0 }
 0x22f   : > { %v2739_v36 = vadd.f32 %v2738_v17, %v4713_v31 }
 0x258   : > { %v2775_v46 = vpop.f32.mrf.mxu1 }
 0x259   : > { %v2776_v2 = vadd.f32 %v2775_v46, %v2733_v14  ;;  %v3070_v46 = vmul.f32 %v3051_v51, %v3040_v35 }
 0x25a   : > { %v2777_v50 = vpop.f32.mrf.mxu1 }
 0x25b   : > { %v2778_v26 = vadd.f32 %v2777_v50, %v2735_v3  ;;  %v3082_v60 = vadd.f32 %v3070_v46, %v3069_v4 }
 0x25c   : > { %v2779_v54 = vpop.f32.mrf.mxu1 }
 0x25d   : > { %v2780_v37 = vadd.f32 %v2779_v54, %v2737_v25 }
 0x25e   : > { %v2781_v63 = vpop.f32.mrf.mxu1 }
 0x25f   : > { %v2782_v43 = vadd.f32 %v2781_v63, %v2739_v36 }
 0x260   : > { %v2861_v13 = vpop.f32.mrf.mxu1 }
 0x262   : > { %v2863_v24 = vpop.f32.mrf.mxu1 }
 0x264   : > { %v2865_v42 = vpop.f32.mrf.mxu1 }
 0x266   : > { %v2867_v54 = vpop.f32.mrf.mxu1 }
 0x268   : > { %v2818_v1 = vpop.f32.mrf.mxu0 }
 0x269   : > { %v2819_v27 = vadd.f32 %v2818_v1, %v2776_v2 }
 0x26a   : > { %v2820_v28 = vpop.f32.mrf.mxu0 }
 0x26b   : > { %v2862_v0 = vadd.f32 %v2861_v13, %v2819_v27  ;;  %v2821_v18 = vadd.f32 %v2820_v28, %v2778_v26 }
 0x26c   : > { %v2822_v29 = vpop.f32.mrf.mxu0 }
 0x26d   : > { %v3036_v44 = vmax.f32 %v2862_v0, 0.0  ;;  %v2864_v49 = vadd.f32 %v2863_v24, %v2821_v18  ;;  %v2823_v45 = vadd.f32 %v2822_v29, %v2780_v37  ;;  %v4092_v18 = vld [vmem:[%s4370_s8 + $0x20] sm:$0x1f] }
 0x26e   : > { %v2824_v47 = vpop.f32.mrf.mxu0  ;;  %v3063_v38 = vrot.slane %v4092_v18, %v4720_v9 }
 0x26f   : > { %v3066_v50 = vmul.f32 %v3055_v33, %v3036_v44  ;;  %v3037_v52 = vmax.f32 %v2864_v49, 0.0  ;;  %v2866_v31 = vadd.f32 %v2865_v42, %v2823_v45  ;;  %v2825_v53 = vadd.f32 %v2824_v47, %v2782_v43 }
 0x270   : > { %v3091_v45 = vsub.s32 4, %v4717_v59 }
 0x271   : > { %v3041_v55 = vmax.f32 %v2866_v31, 0.0  ;;  %v2868_v56 = vadd.f32 %v2867_v54, %v2825_v53  ;;  %v3067_v57 = vmul.f32 %v3059_v39, %v3037_v52  ;;  %v3075_v58 = vadd.f32 %v3074_v48, %v3066_v50 }
 0x272   : > { %v3092_v46 = vrot.slane %v4725_v19, %v3091_v45 }
 0x273   : > { %v3071_v61 = vmul.f32 %v3055_v33, %v3041_v55  ;;  %v3042_v62 = vmax.f32 %v2868_v56, 0.0  ;;  %v3076_v63 = vadd.f32 %v3075_v58, %v3067_v57 }
 0x275   : > { %v3072_v5 = vmul.f32 %v3059_v39, %v3042_v62  ;;  %v3083_v6 = vadd.f32 %v3082_v60, %v3071_v61 }
 0x277   : > { %v3084_v7 = vadd.f32 %v3083_v6, %v3072_v5 }
 0x280   : > { %v3564_v15 = vpop.f32.mrf.mxu1 }
 0x282   : > { %v3565_v16 = vpop.f32.mrf.mxu1 }
 0x283   : > { %v3566_v2 = vadd.f32 %v3565_v16, %v3564_v15 }
 0x284   : > { %v3567_v3 = vpop.f32.mrf.mxu1 }
 0x285   : > { %v2905_v24 = vadd.f32 %v3566_v2, %v4715_v32 }
 0x286   : > { %v3568_v12 = vpop.f32.mrf.mxu1 }
 0x287   : > { %v3569_v1 = vadd.f32 %v3568_v12, %v3567_v3 }
 0x288   : > { %v3586_v8 = vpop.f32.mrf.mxu0 }
 0x289   : > { %v2908_v34 = vadd.f32 %v4711_v30, %v3569_v1 }
 0x28a   : > { %v3587_v10 = vpop.f32.mrf.mxu0 }
 0x28b   : > { %v3588_v21 = vadd.f32 %v3587_v10, %v3586_v8 }
 0x28c   : > { %v3589_v11 = vpop.f32.mrf.mxu0 }
 0x28d   : > { %v2946_v26 = vadd.f32 %v3588_v21, %v2905_v24 }
 0x28e   : > { %v3590_v13 = vpop.f32.mrf.mxu0 }
 0x28f   : > { %v3591_v27 = vadd.f32 %v3590_v13, %v3589_v11 }
 0x290   : > { %v3027_v14 = vpop.f32.mrf.mxu0 }
 0x291   : > { %v2949_v36 = vadd.f32 %v3591_v27, %v2908_v34 }
 0x292   : > { %v3636_v51 = vpop.f32.mrf.mxu0 }
 0x294   : > { %v3030_v23 = vpop.f32.mrf.mxu0 }
 0x296   : > { %v3637_v17 = vpop.f32.mrf.mxu0 }
 0x2a0   : > { %v3608_v22 = vpop.f32.mrf.mxu1 }
 0x2a2   : > { %v3609_v25 = vpop.f32.mrf.mxu1 }
 0x2a3   : > { %v3610_v20 = vadd.f32 %v3609_v25, %v3608_v22 }
 0x2a4   : > { %v3611_v33 = vpop.f32.mrf.mxu1 }
 0x2a5   : > { %v2987_v35 = vadd.f32 %v3610_v20, %v2946_v26 }
 0x2a6   : > { %v3612_v28 = vpop.f32.mrf.mxu1 }
 0x2a7   : > { %v3028_v37 = vadd.f32 %v3027_v14, %v2987_v35  ;;  %v3613_v0 = vadd.f32 %v3612_v28, %v3611_v33 }
 0x2a9   : > { %v2990_v39 = vadd.f32 %v3613_v0, %v2949_v36  ;;  %v3038_v40 = vmax.f32 %v3028_v37, 0.0 }
 0x2ab   : > { %v3031_v32 = vadd.f32 %v3030_v23, %v2990_v39  ;;  %v3068_v41 = vmul.f32 %v3063_v38, %v3038_v40 }
 0x2ad   : > { %v3043_v42 = vmax.f32 %v3031_v32, 0.0  ;;  %v3078_v29 = vsel %vm3077_vm7, %v3068_v41, 0.0 }
 0x2ae   : > { %v3079_v43 = vadd.f32 %v3078_v29, %v3076_v63 }
 0x2af   : > { %v3073_v44 = vmul.f32 %v3063_v38, %v3043_v42 }
 0x2b0   : > { %3080 = vadd.xlane.f32.xlu0 %v3079_v43 }
 0x2b1   : > { %v3085_v30 = vsel %vm3077_vm7, %v3073_v44, 0.0 }
 0x2b2   : > { %v3086_v49 = vadd.f32 %v3085_v30, %v3084_v7 }
 0x2b4   : > { %3087 = vadd.xlane.f32.xlu0 %v3086_v49 }
 0x339   : > { %v3081_v9 = vpop.xlane.xlu0 %3080 }
 0x33a   : > { %v3093_v47 = vadd.f32 %v3092_v46, %v3081_v9 }
 0x33c   : > { %3096 = vst.msk [vmem:[%s352_s18] sm:$0xff] %vm3095_vm8, %v3093_v47 }
 0x33d   : > { %v3088_v48 = vpop.xlane.xlu0 %3087 }
 0x33e   : > { %v3094_v50 = vadd.f32 %v3092_v46, %v3088_v48 }
 0x340   : > { %3097 = vst.msk [vmem:[%s352_s18 + $0x8] sm:$0xff] %vm3095_vm8, %v3094_v50 }
 0x341 PF: > { %s19_s23 = sadd.s32 1, %s4201_s23   ;;  %s4773_s18 = smov %s4185_s19 }
 0x342   : > { %p16_p1 = scmp.ge.s32.totalorder %s19_s23, 4   ;;  %s4774_s19 = smov %s4189_s20 }
 0x343   : > { %s4775_s20 = smov %s4320_s17  ;;  %s4776_s21 = smov %s4197_s22 }
 0x344   : > { %s4777_s22 = smov %s4779_s6  ;;  %18 = sbr.rel (!%p16_p1) target bundleno = 5 (0x5), region = 95 }
 0x349   :  { %3128 = vsyncpa [#allocation3], 1 }
 0x34a   :  { %3130 = vsyncpa [#allocation3 + $0x1], 1 }
 0x34b   :  { %3131 = vsyncpa [#allocation5], 1 }
 0x34c   :  { %3133 = vsyncpa [#allocation5 + $0x1], 1 }

</bundles_post_ra>
